<compile_context>
chip_gen: v6e
topology: v6e:2x2x1
jax: 0.10.0
libtpu: 0.0.40
codegen_flags: <defaults>
</compile_context>

<pallas_src>
import functools

import jax
import jax.numpy as jnp
from jax.experimental import pallas as pl
from jax.experimental.pallas import tpu as pltpu


def _mha_kernel(q_ref, kv_ref, wq_ref, wkv_ref, wo_ref,
                bq_ref, bkv_ref, bo_ref, o_ref, kv_cache_ref, *, num_heads):
    """One (batch, Lq-tile) per grid step: projections + attention + out-proj."""
    E = q_ref.shape[2]
    head_dim = E // num_heads
    bq = q_ref.shape[1]

    # Fused K/V projection, hoisted: run only on the first Lq tile of each batch and
    # cache the bf16 result in persistent VMEM scratch for all remaining Lq tiles.
    @pl.when(pl.program_id(1) == 0)
    def _():
        kv = jnp.dot(kv_ref[0], wkv_ref[...],
                     preferred_element_type=jnp.float32) + bkv_ref[0]      # (Lkv, 2E) f32
        kv_cache_ref[...] = kv.astype(jnp.bfloat16)

    # Q projection (softmax scale already folded into wq/bq at prepare time).
    q = jnp.dot(q_ref[0], wq_ref[...],
                preferred_element_type=jnp.float32) + bq_ref[0]            # (bq, E) f32
    q_b = q.astype(jnp.bfloat16)
    kv_b = kv_cache_ref[...]                                               # (Lkv, 2E) bf16

    def head_pv(h):
        lo = h * head_dim
        qh = q_b[:, lo:lo + head_dim]                                      # (bq, Dh)
        kh = kv_b[:, lo:lo + head_dim]                                     # (Lkv, Dh)
        vh = kv_b[:, E + lo:E + lo + head_dim]                             # (Lkv, Dh)
        # Contract on the last dim of both operands -> K never transposed on the XLU.
        s = jax.lax.dot_general(qh, kh, (((1,), (1,)), ((), ())),
                                preferred_element_type=jnp.float32)        # (bq, Lkv)
        s = s - jnp.max(s, axis=-1, keepdims=True)
        p = jnp.exp(s)                                                     # f32 softmax math
        inv_l = pl.reciprocal(jnp.sum(p, axis=-1, keepdims=True), approx=True)
        pv = jnp.dot(p.astype(jnp.bfloat16), vh,
                     preferred_element_type=jnp.float32)                   # (bq, Dh)
        return pv * inv_l                                                  # normalize after PV

    if head_dim % 128 == 0:
        # Lane-aligned head slices: cheap concat, one dense output-projection matmul.
        ctx = jnp.concatenate([head_pv(h) for h in range(num_heads)],
                              axis=-1).astype(jnp.bfloat16)                # (bq, E)
        out = jnp.dot(ctx, wo_ref[...],
                      preferred_element_type=jnp.float32) + bo_ref[0]
    else:
        # Dh not a multiple of 128: accumulate each head straight into the output
        # projection (avoids an H-way XLU concat / masked moves, bounds live ranges).
        out = jnp.broadcast_to(bo_ref[0], (bq, E)).astype(jnp.float32)
        for h in range(num_heads):
            lo = h * head_dim
            pv = head_pv(h).astype(jnp.bfloat16)
            out = out + jnp.dot(pv, wo_ref[lo:lo + head_dim, :],
                                preferred_element_type=jnp.float32)

    o_ref[0] = out.astype(o_ref.dtype)


def prepare_params(params, num_heads):
    """One-time rearrangement of PyTorch-convention weights for the kernel:
    transpose to (in, out), fuse K/V, fold softmax scale into Wq/bq, cast to bf16."""
    E = params["wq"].shape[0]
    scale = 1.0 / ((E // num_heads) ** 0.5)
    return {
        "wq_t": (params["wq"] * scale).T.astype(jnp.bfloat16),                    # (E, E)
        "wkv_t": jnp.concatenate([params["wk"].T, params["wv"].T],
                                 axis=1).astype(jnp.bfloat16),                    # (E, 2E)
        "wo_t": params["wo"].T.astype(jnp.bfloat16),                              # (E, E)
        "bq": (params["bq"] * scale).astype(jnp.float32),                         # (1, E)
        "bkv": jnp.concatenate([params["bk"], params["bv"]],
                               axis=1).astype(jnp.float32),                       # (1, 2E)
        "bo": params["bo"].astype(jnp.float32),                                   # (1, E)
    }


def _vmem_capacity_bytes():
    try:
        return int(pltpu.get_tpu_info().vmem_capacity_bytes)
    except Exception:
        return 128 * 1024 * 1024  # v5e/v6e default; conservative only for v7x fallback


def _vmem_limit_bytes(block_q, lkv, E, num_heads, single_buffer_weights):
    bf16, f32 = 2, 4
    head_dim = E // num_heads
    wbuf = 1 if single_buffer_weights else 2
    io = 2 * (block_q * E * bf16            # q tile (bf16 in), double-buffered
              + block_q * E * f32           # out tile (f32 out)
              + lkv * E * bf16)             # kv tile (bf16 in)
    weights = wbuf * (4 * E * E * bf16 + 4 * E * f32)
    kv_cache = lkv * 2 * E * bf16           # persistent projected-KV scratch
    live = (block_q * E * f32               # q projection
            + lkv * 2 * E * f32             # transient f32 KV projection (first tile)
            + 2 * block_q * lkv * f32       # per-head scores + probs
            + block_q * E * f32             # output accumulator / ctx
            + block_q * head_dim * f32)     # per-head pv
    est = int((io + weights + kv_cache + live) * 1.25) + (1 << 20)
    cap = int(_vmem_capacity_bytes() * 0.75)   # ~96 MiB v5e/v6e, ~48 MiB v7x
    return min(max(est, 32 * 1024 * 1024), cap)


def _default_block_q(Lq):
    try:
        kind = jax.devices()[0].device_kind.lower()
    except Exception:
        kind = ""
    # v5e: 4x(128x128) MXU -> 256-row tiles only inflate score buffers / vreg pressure.
    cap = 128 if ("v5 lite" in kind or "v5e" in kind or "v5lite" in kind) else 256
    return Lq if Lq <= cap else cap


def cross_attention(query, key_value, prepared, num_heads, *, block_q=None):
    """query: (B, Lq, E), key_value: (B, Lkv, E) -> (B, Lq, E)."""
    B, Lq, E = query.shape
    _, Lkv, _ = key_value.shape
    out_dtype = query.dtype

    if block_q is None:
        block_q = _default_block_q(Lq)
    block_q = min(block_q, Lq)
    n_q = pl.cdiv(Lq, block_q)

    # bf16 activation DMA: halves HBM->VMEM bytes and the resident kv block.
    q_bf = query.astype(jnp.bfloat16)
    kv_bf = key_value.astype(jnp.bfloat16)

    kernel = functools.partial(_mha_kernel, num_heads=num_heads)

    flops = B * (2 * Lq * E * E            # q projection
                 + 2 * Lkv * E * 2 * E     # fused k/v projection (once per batch)
                 + 4 * Lq * Lkv * E        # scores + PV over all heads
                 + 2 * Lq * E * E)         # output projection
    bytes_accessed = (2 * B * (Lq * E + Lkv * E)    # bf16 activations in
                      + 4 * B * Lq * E              # f32 activations out
                      + 2 * 4 * E * E               # bf16 weights
                      + 4 * 4 * E)                  # f32 biases
    cost = pl.CostEstimate(flops=flops,
                           transcendentals=B * num_heads * Lq * Lkv,
                           bytes_accessed=bytes_accessed)

    def build(single_buffer_weights):
        q_spec = pl.BlockSpec((1, block_q, E), lambda b, i: (b, i, 0))
        kv_spec = pl.BlockSpec((1, Lkv, E), lambda b, i: (b, 0, 0))
        out_spec = pl.BlockSpec((1, block_q, E), lambda b, i: (b, i, 0))

        def const_spec(shape):
            # Grid-invariant blocks: a single buffer is enough (default double buffer
            # is pure VMEM waste for constant index_maps).
            if single_buffer_weights:
                return pl.BlockSpec(shape, lambda b, i: (0,) * len(shape),
                                    pipeline_mode=pl.Buffered(1))
            return pl.BlockSpec(shape, lambda b, i: (0,) * len(shape))

        return pl.pallas_call(
            kernel,
            out_shape=jax.ShapeDtypeStruct((B, Lq, E), out_dtype),
            grid=(B, n_q),
            in_specs=[q_spec, kv_spec,
                      const_spec((E, E)), const_spec((E, 2 * E)), const_spec((E, E)),
                      const_spec((1, E)), const_spec((1, 2 * E)), const_spec((1, E))],
            out_specs=out_spec,
            scratch_shapes=[pltpu.VMEM((Lkv, 2 * E), jnp.bfloat16)],
            compiler_params=pltpu.CompilerParams(
                # Lq axis must be "arbitrary": the projected-KV scratch computed at
                # program_id(1)==0 is reused across Lq tiles of the same batch.
                dimension_semantics=("parallel", "arbitrary"),
                vmem_limit_bytes=_vmem_limit_bytes(block_q, Lkv, E, num_heads,
                                                   single_buffer_weights)),
            cost_estimate=cost,
        )

    args = (q_bf, kv_bf,
            prepared["wq_t"], prepared["wkv_t"], prepared["wo_t"],
            prepared["bq"], prepared["bkv"], prepared["bo"])
    try:
        out = build(single_buffer_weights=True)(*args)
        return jax.block_until_ready(out)
    except Exception:
        # Fallback for Pallas versions without BlockSpec(pipeline_mode=...): identical
        # semantics, just default double-buffered weights (2x weight VMEM).
        return build(single_buffer_weights=False)(*args)


def init_params(key, embed_dim):
    """Deterministic synthetic init mirroring nn.MultiheadAttention shapes:
    in_proj_weight (3E, E) split into Wq/Wk/Wv; out_proj (E, E); small biases."""
    k1, k2, k3, k4 = jax.random.split(key, 4)
    bound = 1.0 / (embed_dim ** 0.5)
    wq = jax.random.uniform(k1, (embed_dim, embed_dim), jnp.float32, -bound, bound)
    wk = jax.random.uniform(k2, (embed_dim, embed_dim), jnp.float32, -bound, bound)
    wv = jax.random.uniform(k3, (embed_dim, embed_dim), jnp.float32, -bound, bound)
    wo = jax.random.uniform(k4, (embed_dim, embed_dim), jnp.float32, -bound, bound)
    return {
        "wq": wq, "wk": wk, "wv": wv, "wo": wo,
        "bq": jnp.full((1, embed_dim), 0.01, jnp.float32),
        "bk": jnp.full((1, embed_dim), -0.01, jnp.float32),
        "bv": jnp.full((1, embed_dim), 0.02, jnp.float32),
        "bo": jnp.zeros((1, embed_dim), jnp.float32),
    }


def _reference(query, key_value, params, num_heads):
    """Pure-JAX f32 reference reproducing nn.MultiheadAttention forward."""
    B, Lq, E = query.shape
    Lkv = key_value.shape[1]
    Dh = E // num_heads
    q = query @ params["wq"].T + params["bq"][0]
    k = key_value @ params["wk"].T + params["bk"][0]
    v = key_value @ params["wv"].T + params["bv"][0]
    q = q.reshape(B, Lq, num_heads, Dh).transpose(0, 2, 1, 3)
    k = k.reshape(B, Lkv, num_heads, Dh).transpose(0, 2, 1, 3)
    v = v.reshape(B, Lkv, num_heads, Dh).transpose(0, 2, 1, 3)
    s = jnp.einsum("bhqd,bhkd->bhqk", q, k) / (Dh ** 0.5)
    p = jax.nn.softmax(s, axis=-1)
    o = jnp.einsum("bhqk,bhkd->bhqd", p, v)
    o = o.transpose(0, 2, 1, 3).reshape(B, Lq, E)
    return o @ params["wo"].T + params["bo"][0]


if __name__ == "__main__":
    B, Lq, Lkv, E, H = 2, 8, 8, 32, 4

    key = jax.random.PRNGKey(0)
    kq, kkv, kp = jax.random.split(key, 3)
    query = jax.random.normal(kq, (B, Lq, E), jnp.float32)
    key_value = jax.random.normal(kkv, (B, Lkv, E), jnp.float32)
    params = init_params(kp, E)
    prepared = prepare_params(params, H)

    out = cross_attention(query, key_value, prepared, H)
    out = jax.block_until_ready(out)

    ref = _reference(query, key_value, params, H)
    assert out.shape == (B, Lq, E)
    # bf16 MXU operands + approx reciprocal -> looser tolerance than pure f32.
    max_err = float(jnp.max(jnp.abs(out - ref)))
    assert jnp.allclose(out, ref, atol=5e-2, rtol=5e-2), f"mismatch vs reference (max abs err {max_err})"

    print("KERNEL_OK")
</pallas_src>

<mosaic_0001>
module attributes {stable_mosaic.version = 11 : i64} {
  func.func @_mha_kernel(%arg0: i32, %arg1: i32, %arg2: memref<1x8x32xbf16, #tpu.memory_space<vmem>>, %arg3: memref<1x8x32xbf16, #tpu.memory_space<vmem>>, %arg4: memref<32x32xbf16, #tpu.memory_space<vmem>>, %arg5: memref<32x64xbf16, #tpu.memory_space<vmem>>, %arg6: memref<32x32xbf16, #tpu.memory_space<vmem>>, %arg7: memref<1x32xf32, #tpu.memory_space<vmem>>, %arg8: memref<1x64xf32, #tpu.memory_space<vmem>>, %arg9: memref<1x32xf32, #tpu.memory_space<vmem>>, %arg10: memref<1x8x32xf32, #tpu.memory_space<vmem>>, %arg11: memref<8x64xbf16, #tpu.memory_space<vmem>>) attributes {dimension_semantics = [#tpu.dimension_semantics<parallel>, #tpu.dimension_semantics<arbitrary>], iteration_bounds = array<i64: 2, 1>, scalar_prefetch = 0 : i64, scratch_operands = 1 : i64, tpu.core_type = #tpu.core_type<tc>, window_params = [{transform_indices = @transform_0, window_bounds = array<i64: 1, 8, 32>}, {transform_indices = @transform_1, window_bounds = array<i64: 1, 8, 32>}, {pipeline_mode = #tpu.pipeline_mode<synchronous>, transform_indices = @transform_2, window_bounds = array<i64: 32, 32>}, {pipeline_mode = #tpu.pipeline_mode<synchronous>, transform_indices = @transform_3, window_bounds = array<i64: 32, 64>}, {pipeline_mode = #tpu.pipeline_mode<synchronous>, transform_indices = @transform_4, window_bounds = array<i64: 32, 32>}, {pipeline_mode = #tpu.pipeline_mode<synchronous>, transform_indices = @transform_5, window_bounds = array<i64: 1, 32>}, {pipeline_mode = #tpu.pipeline_mode<synchronous>, transform_indices = @transform_6, window_bounds = array<i64: 1, 64>}, {pipeline_mode = #tpu.pipeline_mode<synchronous>, transform_indices = @transform_7, window_bounds = array<i64: 1, 32>}, {transform_indices = @transform_8, window_bounds = array<i64: 1, 8, 32>}]} {
    %c0_i32 = arith.constant 0 : i32
    %0 = arith.cmpi eq, %arg1, %c0_i32 : i32
    %1 = arith.extui %0 : i1 to i32
    %c0_i32_0 = arith.constant 0 : i32
    %2 = arith.cmpi ne, %1, %c0_i32_0 : i32
    scf.if %2 {
      %c0_39 = arith.constant 0 : index
      %c0_40 = arith.constant 0 : index
      %c0_41 = arith.constant 0 : index
      %101 = vector.load %arg3[%c0_39, %c0_40, %c0_41] : memref<1x8x32xbf16, #tpu.memory_space<vmem>>, vector<1x8x32xbf16>
      %102 = vector.shape_cast %101 : vector<1x8x32xbf16> to vector<8x32xbf16>
      %c0_42 = arith.constant 0 : index
      %c0_43 = arith.constant 0 : index
      %103 = vector.load %arg5[%c0_42, %c0_43] : memref<32x64xbf16, #tpu.memory_space<vmem>>, vector<32x64xbf16>
      %cst_44 = arith.constant dense<0.000000e+00> : vector<8x64xf32>
      %104 = tpu.matmul %102, %103, %cst_44 {dimension_numbers = #tpu.dot_dimension_numbers<[1], [0], [0], [1], [0, 0, 1, 1], [], []>} : vector<8x32xbf16>, vector<32x64xbf16>, vector<8x64xf32> -> vector<8x64xf32>
      %c0_45 = arith.constant 0 : index
      %c0_46 = arith.constant 0 : index
      %105 = vector.load %arg8[%c0_45, %c0_46] : memref<1x64xf32, #tpu.memory_space<vmem>>, vector<1x64xf32>
      %106 = vector.shape_cast %105 : vector<1x64xf32> to vector<64xf32>
      %107 = vector.shape_cast %106 : vector<64xf32> to vector<1x64xf32>
      %108 = vector.broadcast %107 : vector<1x64xf32> to vector<8x64xf32>
      %109 = arith.addf %104, %108 : vector<8x64xf32>
      %110 = arith.truncf %109 : vector<8x64xf32> to vector<8x64xbf16>
      %c0_47 = arith.constant 0 : index
      %c0_48 = arith.constant 0 : index
      %111 = vector.load %arg11[%c0_47, %c0_48] : memref<8x64xbf16, #tpu.memory_space<vmem>>, vector<8x64xbf16>
      tpu.vector_store %arg11[%c0_47, %c0_48], %110 {strides = array<i32>} : memref<8x64xbf16, #tpu.memory_space<vmem>>, vector<8x64xbf16>,
    } else {
    }
    %c0 = arith.constant 0 : index
    %c0_1 = arith.constant 0 : index
    %c0_2 = arith.constant 0 : index
    %3 = vector.load %arg2[%c0, %c0_1, %c0_2] : memref<1x8x32xbf16, #tpu.memory_space<vmem>>, vector<1x8x32xbf16>
    %4 = vector.shape_cast %3 : vector<1x8x32xbf16> to vector<8x32xbf16>
    %c0_3 = arith.constant 0 : index
    %c0_4 = arith.constant 0 : index
    %5 = vector.load %arg4[%c0_3, %c0_4] : memref<32x32xbf16, #tpu.memory_space<vmem>>, vector<32x32xbf16>
    %cst = arith.constant dense<0.000000e+00> : vector<8x32xf32>
    %6 = tpu.matmul %4, %5, %cst {dimension_numbers = #tpu.dot_dimension_numbers<[1], [0], [0], [1], [0, 0, 1, 1], [], []>} : vector<8x32xbf16>, vector<32x32xbf16>, vector<8x32xf32> -> vector<8x32xf32>
    %c0_5 = arith.constant 0 : index
    %c0_6 = arith.constant 0 : index
    %7 = vector.load %arg7[%c0_5, %c0_6] : memref<1x32xf32, #tpu.memory_space<vmem>>, vector<1x32xf32>
    %8 = vector.shape_cast %7 : vector<1x32xf32> to vector<32xf32>
    %9 = vector.shape_cast %8 : vector<32xf32> to vector<1x32xf32>
    %10 = vector.broadcast %9 : vector<1x32xf32> to vector<8x32xf32>
    %11 = arith.addf %6, %10 : vector<8x32xf32>
    %12 = arith.truncf %11 : vector<8x32xf32> to vector<8x32xbf16>
    %c0_7 = arith.constant 0 : index
    %c0_8 = arith.constant 0 : index
    %13 = vector.load %arg11[%c0_7, %c0_8] : memref<8x64xbf16, #tpu.memory_space<vmem>>, vector<8x64xbf16>
    %c0_9 = arith.constant 0 : index
    %c0_10 = arith.constant 0 : index
    %14 = vector.load %arg9[%c0_9, %c0_10] : memref<1x32xf32, #tpu.memory_space<vmem>>, vector<1x32xf32>
    %15 = vector.shape_cast %14 : vector<1x32xf32> to vector<32xf32>
    %16 = vector.shape_cast %15 : vector<32xf32> to vector<1x32xf32>
    %17 = vector.broadcast %16 : vector<1x32xf32> to vector<8x32xf32>
    %18 = vector.extract_strided_slice %12 {offsets = [0, 0], sizes = [8, 8], strides = [1, 1]} : vector<8x32xbf16> to vector<8x8xbf16>
    %19 = vector.extract_strided_slice %13 {offsets = [0, 0], sizes = [8, 8], strides = [1, 1]} : vector<8x64xbf16> to vector<8x8xbf16>
    %20 = vector.extract_strided_slice %13 {offsets = [0, 32], sizes = [8, 8], strides = [1, 1]} : vector<8x64xbf16> to vector<8x8xbf16>
    %cst_11 = arith.constant dense<0.000000e+00> : vector<8x8xf32>
    %21 = tpu.matmul %18, %19, %cst_11 {dimension_numbers = #tpu.dot_dimension_numbers<[1], [1], [0], [0], [0, 0, 1, 0], [], []>} : vector<8x8xbf16>, vector<8x8xbf16>, vector<8x8xf32> -> vector<8x8xf32>
    %cst_12 = arith.constant dense<0xFF800000> : vector<8xf32>
    %22 = vector.multi_reduction <maximumf>, %21, %cst_12 [1] : vector<8x8xf32> to vector<8xf32>
    %23 = vector.shape_cast %22 : vector<8xf32> to vector<8x1xf32>
    %24 = vector.broadcast %23 : vector<8x1xf32> to vector<8x8xf32>
    %25 = arith.subf %21, %24 : vector<8x8xf32>
    %26 = math.exp %25 : vector<8x8xf32>
    %cst_13 = arith.constant dense<0.000000e+00> : vector<8xf32>
    %27 = vector.multi_reduction <add>, %26, %cst_13 [1] : vector<8x8xf32> to vector<8xf32>
    %28 = vector.shape_cast %27 : vector<8xf32> to vector<8x1xf32>
    %29 = tpu.reciprocal %28 {approx = true} : vector<8x1xf32> -> vector<8x1xf32>
    %30 = arith.truncf %26 : vector<8x8xf32> to vector<8x8xbf16>
    %cst_14 = arith.constant dense<0.000000e+00> : vector<8x8xf32>
    %31 = tpu.matmul %30, %20, %cst_14 {dimension_numbers = #tpu.dot_dimension_numbers<[1], [0], [0], [1], [0, 0, 1, 1], [], []>} : vector<8x8xbf16>, vector<8x8xbf16>, vector<8x8xf32> -> vector<8x8xf32>
    %32 = vector.broadcast %29 : vector<8x1xf32> to vector<8x8xf32>
    %33 = arith.mulf %31, %32 : vector<8x8xf32>
    %34 = arith.truncf %33 : vector<8x8xf32> to vector<8x8xbf16>
    %c0_15 = arith.constant 0 : index
    %c0_16 = arith.constant 0 : index
    %35 = vector.load %arg6[%c0_15, %c0_16] : memref<32x32xbf16, #tpu.memory_space<vmem>>, vector<8x32xbf16>
    %cst_17 = arith.constant dense<0.000000e+00> : vector<8x32xf32>
    %36 = tpu.matmul %34, %35, %cst_17 {dimension_numbers = #tpu.dot_dimension_numbers<[1], [0], [0], [1], [0, 0, 1, 1], [], []>} : vector<8x8xbf16>, vector<8x32xbf16>, vector<8x32xf32> -> vector<8x32xf32>
    %37 = arith.addf %17, %36 : vector<8x32xf32>
    %38 = vector.extract_strided_slice %12 {offsets = [0, 8], sizes = [8, 8], strides = [1, 1]} : vector<8x32xbf16> to vector<8x8xbf16>
    %39 = vector.extract_strided_slice %13 {offsets = [0, 8], sizes = [8, 8], strides = [1, 1]} : vector<8x64xbf16> to vector<8x8xbf16>
    %40 = vector.extract_strided_slice %13 {offsets = [0, 40], sizes = [8, 8], strides = [1, 1]} : vector<8x64xbf16> to vector<8x8xbf16>
    %cst_18 = arith.constant dense<0.000000e+00> : vector<8x8xf32>
    %41 = tpu.matmul %38, %39, %cst_18 {dimension_numbers = #tpu.dot_dimension_numbers<[1], [1], [0], [0], [0, 0, 1, 0], [], []>} : vector<8x8xbf16>, vector<8x8xbf16>, vector<8x8xf32> -> vector<8x8xf32>
    %cst_19 = arith.constant dense<0xFF800000> : vector<8xf32>
    %42 = vector.multi_reduction <maximumf>, %41, %cst_19 [1] : vector<8x8xf32> to vector<8xf32>
    %43 = vector.shape_cast %42 : vector<8xf32> to vector<8x1xf32>
    %44 = vector.broadcast %43 : vector<8x1xf32> to vector<8x8xf32>
    %45 = arith.subf %41, %44 : vector<8x8xf32>
    %46 = math.exp %45 : vector<8x8xf32>
    %cst_20 = arith.constant dense<0.000000e+00> : vector<8xf32>
    %47 = vector.multi_reduction <add>, %46, %cst_20 [1] : vector<8x8xf32> to vector<8xf32>
    %48 = vector.shape_cast %47 : vector<8xf32> to vector<8x1xf32>
    %49 = tpu.reciprocal %48 {approx = true} : vector<8x1xf32> -> vector<8x1xf32>
    %50 = arith.truncf %46 : vector<8x8xf32> to vector<8x8xbf16>
    %cst_21 = arith.constant dense<0.000000e+00> : vector<8x8xf32>
    %51 = tpu.matmul %50, %40, %cst_21 {dimension_numbers = #tpu.dot_dimension_numbers<[1], [0], [0], [1], [0, 0, 1, 1], [], []>} : vector<8x8xbf16>, vector<8x8xbf16>, vector<8x8xf32> -> vector<8x8xf32>
    %52 = vector.broadcast %49 : vector<8x1xf32> to vector<8x8xf32>
    %53 = arith.mulf %51, %52 : vector<8x8xf32>
    %54 = arith.truncf %53 : vector<8x8xf32> to vector<8x8xbf16>
    %c8 = arith.constant 8 : index
    %c0_22 = arith.constant 0 : index
    %55 = vector.load %arg6[%c8, %c0_22] : memref<32x32xbf16, #tpu.memory_space<vmem>>, vector<8x32xbf16>
    %cst_23 = arith.constant dense<0.000000e+00> : vector<8x32xf32>
    %56 = tpu.matmul %54, %55, %cst_23 {dimension_numbers = #tpu.dot_dimension_numbers<[1], [0], [0], [1], [0, 0, 1, 1], [], []>} : vector<8x8xbf16>, vector<8x32xbf16>, vector<8x32xf32> -> vector<8x32xf32>
    %57 = arith.addf %37, %56 : vector<8x32xf32>
    %58 = vector.extract_strided_slice %12 {offsets = [0, 16], sizes = [8, 8], strides = [1, 1]} : vector<8x32xbf16> to vector<8x8xbf16>
    %59 = vector.extract_strided_slice %13 {offsets = [0, 16], sizes = [8, 8], strides = [1, 1]} : vector<8x64xbf16> to vector<8x8xbf16>
    %60 = vector.extract_strided_slice %13 {offsets = [0, 48], sizes = [8, 8], strides = [1, 1]} : vector<8x64xbf16> to vector<8x8xbf16>
    %cst_24 = arith.constant dense<0.000000e+00> : vector<8x8xf32>
    %61 = tpu.matmul %58, %59, %cst_24 {dimension_numbers = #tpu.dot_dimension_numbers<[1], [1], [0], [0], [0, 0, 1, 0], [], []>} : vector<8x8xbf16>, vector<8x8xbf16>, vector<8x8xf32> -> vector<8x8xf32>
    %cst_25 = arith.constant dense<0xFF800000> : vector<8xf32>
    %62 = vector.multi_reduction <maximumf>, %61, %cst_25 [1] : vector<8x8xf32> to vector<8xf32>
    %63 = vector.shape_cast %62 : vector<8xf32> to vector<8x1xf32>
    %64 = vector.broadcast %63 : vector<8x1xf32> to vector<8x8xf32>
    %65 = arith.subf %61, %64 : vector<8x8xf32>
    %66 = math.exp %65 : vector<8x8xf32>
    %cst_26 = arith.constant dense<0.000000e+00> : vector<8xf32>
    %67 = vector.multi_reduction <add>, %66, %cst_26 [1] : vector<8x8xf32> to vector<8xf32>
    %68 = vector.shape_cast %67 : vector<8xf32> to vector<8x1xf32>
    %69 = tpu.reciprocal %68 {approx = true} : vector<8x1xf32> -> vector<8x1xf32>
    %70 = arith.truncf %66 : vector<8x8xf32> to vector<8x8xbf16>
    %cst_27 = arith.constant dense<0.000000e+00> : vector<8x8xf32>
    %71 = tpu.matmul %70, %60, %cst_27 {dimension_numbers = #tpu.dot_dimension_numbers<[1], [0], [0], [1], [0, 0, 1, 1], [], []>} : vector<8x8xbf16>, vector<8x8xbf16>, vector<8x8xf32> -> vector<8x8xf32>
    %72 = vector.broadcast %69 : vector<8x1xf32> to vector<8x8xf32>
    %73 = arith.mulf %71, %72 : vector<8x8xf32>
    %74 = arith.truncf %73 : vector<8x8xf32> to vector<8x8xbf16>
    %c16 = arith.constant 16 : index
    %c0_28 = arith.constant 0 : index
    %75 = vector.load %arg6[%c16, %c0_28] : memref<32x32xbf16, #tpu.memory_space<vmem>>, vector<8x32xbf16>
    %cst_29 = arith.constant dense<0.000000e+00> : vector<8x32xf32>
    %76 = tpu.matmul %74, %75, %cst_29 {dimension_numbers = #tpu.dot_dimension_numbers<[1], [0], [0], [1], [0, 0, 1, 1], [], []>} : vector<8x8xbf16>, vector<8x32xbf16>, vector<8x32xf32> -> vector<8x32xf32>
    %77 = arith.addf %57, %76 : vector<8x32xf32>
    %78 = vector.extract_strided_slice %12 {offsets = [0, 24], sizes = [8, 8], strides = [1, 1]} : vector<8x32xbf16> to vector<8x8xbf16>
    %79 = vector.extract_strided_slice %13 {offsets = [0, 24], sizes = [8, 8], strides = [1, 1]} : vector<8x64xbf16> to vector<8x8xbf16>
    %80 = vector.extract_strided_slice %13 {offsets = [0, 56], sizes = [8, 8], strides = [1, 1]} : vector<8x64xbf16> to vector<8x8xbf16>
    %cst_30 = arith.constant dense<0.000000e+00> : vector<8x8xf32>
    %81 = tpu.matmul %78, %79, %cst_30 {dimension_numbers = #tpu.dot_dimension_numbers<[1], [1], [0], [0], [0, 0, 1, 0], [], []>} : vector<8x8xbf16>, vector<8x8xbf16>, vector<8x8xf32> -> vector<8x8xf32>
    %cst_31 = arith.constant dense<0xFF800000> : vector<8xf32>
    %82 = vector.multi_reduction <maximumf>, %81, %cst_31 [1] : vector<8x8xf32> to vector<8xf32>
    %83 = vector.shape_cast %82 : vector<8xf32> to vector<8x1xf32>
    %84 = vector.broadcast %83 : vector<8x1xf32> to vector<8x8xf32>
    %85 = arith.subf %81, %84 : vector<8x8xf32>
    %86 = math.exp %85 : vector<8x8xf32>
    %cst_32 = arith.constant dense<0.000000e+00> : vector<8xf32>
    %87 = vector.multi_reduction <add>, %86, %cst_32 [1] : vector<8x8xf32> to vector<8xf32>
    %88 = vector.shape_cast %87 : vector<8xf32> to vector<8x1xf32>
    %89 = tpu.reciprocal %88 {approx = true} : vector<8x1xf32> -> vector<8x1xf32>
    %90 = arith.truncf %86 : vector<8x8xf32> to vector<8x8xbf16>
    %cst_33 = arith.constant dense<0.000000e+00> : vector<8x8xf32>
    %91 = tpu.matmul %90, %80, %cst_33 {dimension_numbers = #tpu.dot_dimension_numbers<[1], [0], [0], [1], [0, 0, 1, 1], [], []>} : vector<8x8xbf16>, vector<8x8xbf16>, vector<8x8xf32> -> vector<8x8xf32>
    %92 = vector.broadcast %89 : vector<8x1xf32> to vector<8x8xf32>
    %93 = arith.mulf %91, %92 : vector<8x8xf32>
    %94 = arith.truncf %93 : vector<8x8xf32> to vector<8x8xbf16>
    %c24 = arith.constant 24 : index
    %c0_34 = arith.constant 0 : index
    %95 = vector.load %arg6[%c24, %c0_34] : memref<32x32xbf16, #tpu.memory_space<vmem>>, vector<8x32xbf16>
    %cst_35 = arith.constant dense<0.000000e+00> : vector<8x32xf32>
    %96 = tpu.matmul %94, %95, %cst_35 {dimension_numbers = #tpu.dot_dimension_numbers<[1], [0], [0], [1], [0, 0, 1, 1], [], []>} : vector<8x8xbf16>, vector<8x32xbf16>, vector<8x32xf32> -> vector<8x32xf32>
    %97 = arith.addf %77, %96 : vector<8x32xf32>
    %c0_36 = arith.constant 0 : index
    %c0_37 = arith.constant 0 : index
    %c0_38 = arith.constant 0 : index
    %98 = vector.load %arg10[%c0_36, %c0_37, %c0_38] : memref<1x8x32xf32, #tpu.memory_space<vmem>>, vector<1x8x32xf32>
    %99 = vector.shape_cast %98 : vector<1x8x32xf32> to vector<8x32xf32>
    %100 = vector.shape_cast %97 : vector<8x32xf32> to vector<1x8x32xf32>
    tpu.vector_store %arg10[%c0_36, %c0_37, %c0_38], %100 {strides = array<i32>} : memref<1x8x32xf32, #tpu.memory_space<vmem>>, vector<1x8x32xf32>,
    return
  }
  func.func @transform_0(%arg0: i32, %arg1: i32) -> (i32, i32, i32) {
    %c0_i32 = arith.constant 0 : i32
    %c0_i32_0 = arith.constant 0 : i32
    return %arg0, %arg1, %c0_i32 : i32, i32, i32
  }
  func.func @transform_1(%arg0: i32, %arg1: i32) -> (i32, i32, i32) {
    %c0_i32 = arith.constant 0 : i32
    %c0_i32_0 = arith.constant 0 : i32
    %c0_i32_1 = arith.constant 0 : i32
    return %arg0, %c0_i32, %c0_i32_0 : i32, i32, i32
  }
  func.func @transform_2(%arg0: i32, %arg1: i32) -> (i32, i32) {
    %c0_i32 = arith.constant 0 : i32
    %c0_i32_0 = arith.constant 0 : i32
    %c0_i32_1 = arith.constant 0 : i32
    return %c0_i32, %c0_i32_0 : i32, i32
  }
  func.func @transform_3(%arg0: i32, %arg1: i32) -> (i32, i32) {
    %c0_i32 = arith.constant 0 : i32
    %c0_i32_0 = arith.constant 0 : i32
    %c0_i32_1 = arith.constant 0 : i32
    return %c0_i32, %c0_i32_0 : i32, i32
  }
  func.func @transform_4(%arg0: i32, %arg1: i32) -> (i32, i32) {
    %c0_i32 = arith.constant 0 : i32
    %c0_i32_0 = arith.constant 0 : i32
    %c0_i32_1 = arith.constant 0 : i32
    return %c0_i32, %c0_i32_0 : i32, i32
  }
  func.func @transform_5(%arg0: i32, %arg1: i32) -> (i32, i32) {
    %c0_i32 = arith.constant 0 : i32
    %c0_i32_0 = arith.constant 0 : i32
    %c0_i32_1 = arith.constant 0 : i32
    return %c0_i32, %c0_i32_0 : i32, i32
  }
  func.func @transform_6(%arg0: i32, %arg1: i32) -> (i32, i32) {
    %c0_i32 = arith.constant 0 : i32
    %c0_i32_0 = arith.constant 0 : i32
    %c0_i32_1 = arith.constant 0 : i32
    return %c0_i32, %c0_i32_0 : i32, i32
  }
  func.func @transform_7(%arg0: i32, %arg1: i32) -> (i32, i32) {
    %c0_i32 = arith.constant 0 : i32
    %c0_i32_0 = arith.constant 0 : i32
    %c0_i32_1 = arith.constant 0 : i32
    return %c0_i32, %c0_i32_0 : i32, i32
  }
  func.func @transform_8(%arg0: i32, %arg1: i32) -> (i32, i32, i32) {
    %c0_i32 = arith.constant 0 : i32
    %c0_i32_0 = arith.constant 0 : i32
    return %arg0, %arg1, %c0_i32 : i32, i32, i32
  }
}

module attributes {stable_mosaic.version = 11 : i64} {
  func.func @_mha_kernel(%arg0: i32, %arg1: i32, %arg2: memref<1x8x32xbf16, #tpu.memory_space<vmem>>, %arg3: memref<1x8x32xbf16, #tpu.memory_space<vmem>>, %arg4: memref<32x32xbf16, #tpu.memory_space<vmem>>, %arg5: memref<32x64xbf16, #tpu.memory_space<vmem>>, %arg6: memref<32x32xbf16, #tpu.memory_space<vmem>>, %arg7: memref<1x32xf32, #tpu.memory_space<vmem>>, %arg8: memref<1x64xf32, #tpu.memory_space<vmem>>, %arg9: memref<1x32xf32, #tpu.memory_space<vmem>>, %arg10: memref<1x8x32xf32, #tpu.memory_space<vmem>>, %arg11: memref<8x64xbf16, #tpu.memory_space<vmem>>) attributes {dimension_semantics = [#tpu.dimension_semantics<parallel>, #tpu.dimension_semantics<arbitrary>], iteration_bounds = array<i64: 2, 1>, scalar_prefetch = 0 : i64, scratch_operands = 1 : i64, tpu.core_type = #tpu.core_type<tc>, window_params = [{transform_indices = @transform_0, window_bounds = array<i64: 1, 8, 32>}, {transform_indices = @transform_1, window_bounds = array<i64: 1, 8, 32>}, {pipeline_mode = #tpu.pipeline_mode<synchronous>, transform_indices = @transform_2, window_bounds = array<i64: 32, 32>}, {pipeline_mode = #tpu.pipeline_mode<synchronous>, transform_indices = @transform_3, window_bounds = array<i64: 32, 64>}, {pipeline_mode = #tpu.pipeline_mode<synchronous>, transform_indices = @transform_4, window_bounds = array<i64: 32, 32>}, {pipeline_mode = #tpu.pipeline_mode<synchronous>, transform_indices = @transform_5, window_bounds = array<i64: 1, 32>}, {pipeline_mode = #tpu.pipeline_mode<synchronous>, transform_indices = @transform_6, window_bounds = array<i64: 1, 64>}, {pipeline_mode = #tpu.pipeline_mode<synchronous>, transform_indices = @transform_7, window_bounds = array<i64: 1, 32>}, {transform_indices = @transform_8, window_bounds = array<i64: 1, 8, 32>}]} {
    %c0_i32 = arith.constant 0 : i32
    %0 = arith.cmpi eq, %arg1, %c0_i32 : i32
    %1 = arith.extui %0 : i1 to i32
    %c0_i32_0 = arith.constant 0 : i32
    %2 = arith.cmpi ne, %1, %c0_i32_0 : i32
    scf.if %2 {
      %c0_39 = arith.constant 0 : index
      %c0_40 = arith.constant 0 : index
      %c0_41 = arith.constant 0 : index
      %101 = vector.load %arg3[%c0_39, %c0_40, %c0_41] : memref<1x8x32xbf16, #tpu.memory_space<vmem>>, vector<1x8x32xbf16>
      %102 = vector.shape_cast %101 : vector<1x8x32xbf16> to vector<8x32xbf16>
      %c0_42 = arith.constant 0 : index
      %c0_43 = arith.constant 0 : index
      %103 = vector.load %arg5[%c0_42, %c0_43] : memref<32x64xbf16, #tpu.memory_space<vmem>>, vector<32x64xbf16>
      %cst_44 = arith.constant dense<0.000000e+00> : vector<8x64xf32>
      %104 = tpu.matmul %102, %103, %cst_44 {dimension_numbers = #tpu.dot_dimension_numbers<[1], [0], [0], [1], [0, 0, 1, 1], [], []>} : vector<8x32xbf16>, vector<32x64xbf16>, vector<8x64xf32> -> vector<8x64xf32>
      %c0_45 = arith.constant 0 : index
      %c0_46 = arith.constant 0 : index
      %105 = vector.load %arg8[%c0_45, %c0_46] : memref<1x64xf32, #tpu.memory_space<vmem>>, vector<1x64xf32>
      %106 = vector.shape_cast %105 : vector<1x64xf32> to vector<64xf32>
      %107 = vector.shape_cast %106 : vector<64xf32> to vector<1x64xf32>
      %108 = vector.broadcast %107 : vector<1x64xf32> to vector<8x64xf32>
      %109 = arith.addf %104, %108 : vector<8x64xf32>
      %110 = arith.truncf %109 : vector<8x64xf32> to vector<8x64xbf16>
      %c0_47 = arith.constant 0 : index
      %c0_48 = arith.constant 0 : index
      %111 = vector.load %arg11[%c0_47, %c0_48] : memref<8x64xbf16, #tpu.memory_space<vmem>>, vector<8x64xbf16>
      tpu.vector_store %arg11[%c0_47, %c0_48], %110 {strides = array<i32>} : memref<8x64xbf16, #tpu.memory_space<vmem>>, vector<8x64xbf16>,
    } else {
    }
    %c0 = arith.constant 0 : index
    %c0_1 = arith.constant 0 : index
    %c0_2 = arith.constant 0 : index
    %3 = vector.load %arg2[%c0, %c0_1, %c0_2] : memref<1x8x32xbf16, #tpu.memory_space<vmem>>, vector<1x8x32xbf16>
    %4 = vector.shape_cast %3 : vector<1x8x32xbf16> to vector<8x32xbf16>
    %c0_3 = arith.constant 0 : index
    %c0_4 = arith.constant 0 : index
    %5 = vector.load %arg4[%c0_3, %c0_4] : memref<32x32xbf16, #tpu.memory_space<vmem>>, vector<32x32xbf16>
    %cst = arith.constant dense<0.000000e+00> : vector<8x32xf32>
    %6 = tpu.matmul %4, %5, %cst {dimension_numbers = #tpu.dot_dimension_numbers<[1], [0], [0], [1], [0, 0, 1, 1], [], []>} : vector<8x32xbf16>, vector<32x32xbf16>, vector<8x32xf32> -> vector<8x32xf32>
    %c0_5 = arith.constant 0 : index
    %c0_6 = arith.constant 0 : index
    %7 = vector.load %arg7[%c0_5, %c0_6] : memref<1x32xf32, #tpu.memory_space<vmem>>, vector<1x32xf32>
    %8 = vector.shape_cast %7 : vector<1x32xf32> to vector<32xf32>
    %9 = vector.shape_cast %8 : vector<32xf32> to vector<1x32xf32>
    %10 = vector.broadcast %9 : vector<1x32xf32> to vector<8x32xf32>
    %11 = arith.addf %6, %10 : vector<8x32xf32>
    %12 = arith.truncf %11 : vector<8x32xf32> to vector<8x32xbf16>
    %c0_7 = arith.constant 0 : index
    %c0_8 = arith.constant 0 : index
    %13 = vector.load %arg11[%c0_7, %c0_8] : memref<8x64xbf16, #tpu.memory_space<vmem>>, vector<8x64xbf16>
    %c0_9 = arith.constant 0 : index
    %c0_10 = arith.constant 0 : index
    %14 = vector.load %arg9[%c0_9, %c0_10] : memref<1x32xf32, #tpu.memory_space<vmem>>, vector<1x32xf32>
    %15 = vector.shape_cast %14 : vector<1x32xf32> to vector<32xf32>
    %16 = vector.shape_cast %15 : vector<32xf32> to vector<1x32xf32>
    %17 = vector.broadcast %16 : vector<1x32xf32> to vector<8x32xf32>
    %18 = vector.extract_strided_slice %12 {offsets = [0, 0], sizes = [8, 8], strides = [1, 1]} : vector<8x32xbf16> to vector<8x8xbf16>
    %19 = vector.extract_strided_slice %13 {offsets = [0, 0], sizes = [8, 8], strides = [1, 1]} : vector<8x64xbf16> to vector<8x8xbf16>
    %20 = vector.extract_strided_slice %13 {offsets = [0, 32], sizes = [8, 8], strides = [1, 1]} : vector<8x64xbf16> to vector<8x8xbf16>
    %cst_11 = arith.constant dense<0.000000e+00> : vector<8x8xf32>
    %21 = tpu.matmul %18, %19, %cst_11 {dimension_numbers = #tpu.dot_dimension_numbers<[1], [1], [0], [0], [0, 0, 1, 0], [], []>} : vector<8x8xbf16>, vector<8x8xbf16>, vector<8x8xf32> -> vector<8x8xf32>
    %cst_12 = arith.constant dense<0xFF800000> : vector<8xf32>
    %22 = vector.multi_reduction <maximumf>, %21, %cst_12 [1] : vector<8x8xf32> to vector<8xf32>
    %23 = vector.shape_cast %22 : vector<8xf32> to vector<8x1xf32>
    %24 = vector.broadcast %23 : vector<8x1xf32> to vector<8x8xf32>
    %25 = arith.subf %21, %24 : vector<8x8xf32>
    %26 = math.exp %25 : vector<8x8xf32>
    %cst_13 = arith.constant dense<0.000000e+00> : vector<8xf32>
    %27 = vector.multi_reduction <add>, %26, %cst_13 [1] : vector<8x8xf32> to vector<8xf32>
    %28 = vector.shape_cast %27 : vector<8xf32> to vector<8x1xf32>
    %29 = tpu.reciprocal %28 {approx = true} : vector<8x1xf32> -> vector<8x1xf32>
    %30 = arith.truncf %26 : vector<8x8xf32> to vector<8x8xbf16>
    %cst_14 = arith.constant dense<0.000000e+00> : vector<8x8xf32>
    %31 = tpu.matmul %30, %20, %cst_14 {dimension_numbers = #tpu.dot_dimension_numbers<[1], [0], [0], [1], [0, 0, 1, 1], [], []>} : vector<8x8xbf16>, vector<8x8xbf16>, vector<8x8xf32> -> vector<8x8xf32>
    %32 = vector.broadcast %29 : vector<8x1xf32> to vector<8x8xf32>
    %33 = arith.mulf %31, %32 : vector<8x8xf32>
    %34 = arith.truncf %33 : vector<8x8xf32> to vector<8x8xbf16>
    %c0_15 = arith.constant 0 : index
    %c0_16 = arith.constant 0 : index
    %35 = vector.load %arg6[%c0_15, %c0_16] : memref<32x32xbf16, #tpu.memory_space<vmem>>, vector<8x32xbf16>
    %cst_17 = arith.constant dense<0.000000e+00> : vector<8x32xf32>
    %36 = tpu.matmul %34, %35, %cst_17 {dimension_numbers = #tpu.dot_dimension_numbers<[1], [0], [0], [1], [0, 0, 1, 1], [], []>} : vector<8x8xbf16>, vector<8x32xbf16>, vector<8x32xf32> -> vector<8x32xf32>
    %37 = arith.addf %17, %36 : vector<8x32xf32>
    %38 = vector.extract_strided_slice %12 {offsets = [0, 8], sizes = [8, 8], strides = [1, 1]} : vector<8x32xbf16> to vector<8x8xbf16>
    %39 = vector.extract_strided_slice %13 {offsets = [0, 8], sizes = [8, 8], strides = [1, 1]} : vector<8x64xbf16> to vector<8x8xbf16>
    %40 = vector.extract_strided_slice %13 {offsets = [0, 40], sizes = [8, 8], strides = [1, 1]} : vector<8x64xbf16> to vector<8x8xbf16>
    %cst_18 = arith.constant dense<0.000000e+00> : vector<8x8xf32>
    %41 = tpu.matmul %38, %39, %cst_18 {dimension_numbers = #tpu.dot_dimension_numbers<[1], [1], [0], [0], [0, 0, 1, 0], [], []>} : vector<8x8xbf16>, vector<8x8xbf16>, vector<8x8xf32> -> vector<8x8xf32>
    %cst_19 = arith.constant dense<0xFF800000> : vector<8xf32>
    %42 = vector.multi_reduction <maximumf>, %41, %cst_19 [1] : vector<8x8xf32> to vector<8xf32>
    %43 = vector.shape_cast %42 : vector<8xf32> to vector<8x1xf32>
    %44 = vector.broadcast %43 : vector<8x1xf32> to vector<8x8xf32>
    %45 = arith.subf %41, %44 : vector<8x8xf32>
    %46 = math.exp %45 : vector<8x8xf32>
    %cst_20 = arith.constant dense<0.000000e+00> : vector<8xf32>
    %47 = vector.multi_reduction <add>, %46, %cst_20 [1] : vector<8x8xf32> to vector<8xf32>
    %48 = vector.shape_cast %47 : vector<8xf32> to vector<8x1xf32>
    %49 = tpu.reciprocal %48 {approx = true} : vector<8x1xf32> -> vector<8x1xf32>
    %50 = arith.truncf %46 : vector<8x8xf32> to vector<8x8xbf16>
    %cst_21 = arith.constant dense<0.000000e+00> : vector<8x8xf32>
    %51 = tpu.matmul %50, %40, %cst_21 {dimension_numbers = #tpu.dot_dimension_numbers<[1], [0], [0], [1], [0, 0, 1, 1], [], []>} : vector<8x8xbf16>, vector<8x8xbf16>, vector<8x8xf32> -> vector<8x8xf32>
    %52 = vector.broadcast %49 : vector<8x1xf32> to vector<8x8xf32>
    %53 = arith.mulf %51, %52 : vector<8x8xf32>
    %54 = arith.truncf %53 : vector<8x8xf32> to vector<8x8xbf16>
    %c8 = arith.constant 8 : index
    %c0_22 = arith.constant 0 : index
    %55 = vector.load %arg6[%c8, %c0_22] : memref<32x32xbf16, #tpu.memory_space<vmem>>, vector<8x32xbf16>
    %cst_23 = arith.constant dense<0.000000e+00> : vector<8x32xf32>
    %56 = tpu.matmul %54, %55, %cst_23 {dimension_numbers = #tpu.dot_dimension_numbers<[1], [0], [0], [1], [0, 0, 1, 1], [], []>} : vector<8x8xbf16>, vector<8x32xbf16>, vector<8x32xf32> -> vector<8x32xf32>
    %57 = arith.addf %37, %56 : vector<8x32xf32>
    %58 = vector.extract_strided_slice %12 {offsets = [0, 16], sizes = [8, 8], strides = [1, 1]} : vector<8x32xbf16> to vector<8x8xbf16>
    %59 = vector.extract_strided_slice %13 {offsets = [0, 16], sizes = [8, 8], strides = [1, 1]} : vector<8x64xbf16> to vector<8x8xbf16>
    %60 = vector.extract_strided_slice %13 {offsets = [0, 48], sizes = [8, 8], strides = [1, 1]} : vector<8x64xbf16> to vector<8x8xbf16>
    %cst_24 = arith.constant dense<0.000000e+00> : vector<8x8xf32>
    %61 = tpu.matmul %58, %59, %cst_24 {dimension_numbers = #tpu.dot_dimension_numbers<[1], [1], [0], [0], [0, 0, 1, 0], [], []>} : vector<8x8xbf16>, vector<8x8xbf16>, vector<8x8xf32> -> vector<8x8xf32>
    %cst_25 = arith.constant dense<0xFF800000> : vector<8xf32>
    %62 = vector.multi_reduction <maximumf>, %61, %cst_25 [1] : vector<8x8xf32> to vector<8xf32>
    %63 = vector.shape_cast %62 : vector<8xf32> to vector<8x1xf32>
    %64 = vector.broadcast %63 : vector<8x1xf32> to vector<8x8xf32>
    %65 = arith.subf %61, %64 : vector<8x8xf32>
    %66 = math.exp %65 : vector<8x8xf32>
    %cst_26 = arith.constant dense<0.000000e+00> : vector<8xf32>
    %67 = vector.multi_reduction <add>, %66, %cst_26 [1] : vector<8x8xf32> to vector<8xf32>
    %68 = vector.shape_cast %67 : vector<8xf32> to vector<8x1xf32>
    %69 = tpu.reciprocal %68 {approx = true} : vector<8x1xf32> -> vector<8x1xf32>
    %70 = arith.truncf %66 : vector<8x8xf32> to vector<8x8xbf16>
    %cst_27 = arith.constant dense<0.000000e+00> : vector<8x8xf32>
    %71 = tpu.matmul %70, %60, %cst_27 {dimension_numbers = #tpu.dot_dimension_numbers<[1], [0], [0], [1], [0, 0, 1, 1], [], []>} : vector<8x8xbf16>, vector<8x8xbf16>, vector<8x8xf32> -> vector<8x8xf32>
    %72 = vector.broadcast %69 : vector<8x1xf32> to vector<8x8xf32>
    %73 = arith.mulf %71, %72 : vector<8x8xf32>
    %74 = arith.truncf %73 : vector<8x8xf32> to vector<8x8xbf16>
    %c16 = arith.constant 16 : index
    %c0_28 = arith.constant 0 : index
    %75 = vector.load %arg6[%c16, %c0_28] : memref<32x32xbf16, #tpu.memory_space<vmem>>, vector<8x32xbf16>
    %cst_29 = arith.constant dense<0.000000e+00> : vector<8x32xf32>
    %76 = tpu.matmul %74, %75, %cst_29 {dimension_numbers = #tpu.dot_dimension_numbers<[1], [0], [0], [1], [0, 0, 1, 1], [], []>} : vector<8x8xbf16>, vector<8x32xbf16>, vector<8x32xf32> -> vector<8x32xf32>
    %77 = arith.addf %57, %76 : vector<8x32xf32>
    %78 = vector.extract_strided_slice %12 {offsets = [0, 24], sizes = [8, 8], strides = [1, 1]} : vector<8x32xbf16> to vector<8x8xbf16>
    %79 = vector.extract_strided_slice %13 {offsets = [0, 24], sizes = [8, 8], strides = [1, 1]} : vector<8x64xbf16> to vector<8x8xbf16>
    %80 = vector.extract_strided_slice %13 {offsets = [0, 56], sizes = [8, 8], strides = [1, 1]} : vector<8x64xbf16> to vector<8x8xbf16>
    %cst_30 = arith.constant dense<0.000000e+00> : vector<8x8xf32>
    %81 = tpu.matmul %78, %79, %cst_30 {dimension_numbers = #tpu.dot_dimension_numbers<[1], [1], [0], [0], [0, 0, 1, 0], [], []>} : vector<8x8xbf16>, vector<8x8xbf16>, vector<8x8xf32> -> vector<8x8xf32>
    %cst_31 = arith.constant dense<0xFF800000> : vector<8xf32>
    %82 = vector.multi_reduction <maximumf>, %81, %cst_31 [1] : vector<8x8xf32> to vector<8xf32>
    %83 = vector.shape_cast %82 : vector<8xf32> to vector<8x1xf32>
    %84 = vector.broadcast %83 : vector<8x1xf32> to vector<8x8xf32>
    %85 = arith.subf %81, %84 : vector<8x8xf32>
    %86 = math.exp %85 : vector<8x8xf32>
    %cst_32 = arith.constant dense<0.000000e+00> : vector<8xf32>
    %87 = vector.multi_reduction <add>, %86, %cst_32 [1] : vector<8x8xf32> to vector<8xf32>
    %88 = vector.shape_cast %87 : vector<8xf32> to vector<8x1xf32>
    %89 = tpu.reciprocal %88 {approx = true} : vector<8x1xf32> -> vector<8x1xf32>
    %90 = arith.truncf %86 : vector<8x8xf32> to vector<8x8xbf16>
    %cst_33 = arith.constant dense<0.000000e+00> : vector<8x8xf32>
    %91 = tpu.matmul %90, %80, %cst_33 {dimension_numbers = #tpu.dot_dimension_numbers<[1], [0], [0], [1], [0, 0, 1, 1], [], []>} : vector<8x8xbf16>, vector<8x8xbf16>, vector<8x8xf32> -> vector<8x8xf32>
    %92 = vector.broadcast %89 : vector<8x1xf32> to vector<8x8xf32>
    %93 = arith.mulf %91, %92 : vector<8x8xf32>
    %94 = arith.truncf %93 : vector<8x8xf32> to vector<8x8xbf16>
    %c24 = arith.constant 24 : index
    %c0_34 = arith.constant 0 : index
    %95 = vector.load %arg6[%c24, %c0_34] : memref<32x32xbf16, #tpu.memory_space<vmem>>, vector<8x32xbf16>
    %cst_35 = arith.constant dense<0.000000e+00> : vector<8x32xf32>
    %96 = tpu.matmul %94, %95, %cst_35 {dimension_numbers = #tpu.dot_dimension_numbers<[1], [0], [0], [1], [0, 0, 1, 1], [], []>} : vector<8x8xbf16>, vector<8x32xbf16>, vector<8x32xf32> -> vector<8x32xf32>
    %97 = arith.addf %77, %96 : vector<8x32xf32>
    %c0_36 = arith.constant 0 : index
    %c0_37 = arith.constant 0 : index
    %c0_38 = arith.constant 0 : index
    %98 = vector.load %arg10[%c0_36, %c0_37, %c0_38] : memref<1x8x32xf32, #tpu.memory_space<vmem>>, vector<1x8x32xf32>
    %99 = vector.shape_cast %98 : vector<1x8x32xf32> to vector<8x32xf32>
    %100 = vector.shape_cast %97 : vector<8x32xf32> to vector<1x8x32xf32>
    tpu.vector_store %arg10[%c0_36, %c0_37, %c0_38], %100 {strides = array<i32>} : memref<1x8x32xf32, #tpu.memory_space<vmem>>, vector<1x8x32xf32>,
    return
  }
  func.func @transform_0(%arg0: i32, %arg1: i32) -> (i32, i32, i32) {
    %c0_i32 = arith.constant 0 : i32
    %c0_i32_0 = arith.constant 0 : i32
    return %arg0, %arg1, %c0_i32 : i32, i32, i32
  }
  func.func @transform_1(%arg0: i32, %arg1: i32) -> (i32, i32, i32) {
    %c0_i32 = arith.constant 0 : i32
    %c0_i32_0 = arith.constant 0 : i32
    %c0_i32_1 = arith.constant 0 : i32
    return %arg0, %c0_i32, %c0_i32_0 : i32, i32, i32
  }
  func.func @transform_2(%arg0: i32, %arg1: i32) -> (i32, i32) {
    %c0_i32 = arith.constant 0 : i32
    %c0_i32_0 = arith.constant 0 : i32
    %c0_i32_1 = arith.constant 0 : i32
    return %c0_i32, %c0_i32_0 : i32, i32
  }
  func.func @transform_3(%arg0: i32, %arg1: i32) -> (i32, i32) {
    %c0_i32 = arith.constant 0 : i32
    %c0_i32_0 = arith.constant 0 : i32
    %c0_i32_1 = arith.constant 0 : i32
    return %c0_i32, %c0_i32_0 : i32, i32
  }
  func.func @transform_4(%arg0: i32, %arg1: i32) -> (i32, i32) {
    %c0_i32 = arith.constant 0 : i32
    %c0_i32_0 = arith.constant 0 : i32
    %c0_i32_1 = arith.constant 0 : i32
    return %c0_i32, %c0_i32_0 : i32, i32
  }
  func.func @transform_5(%arg0: i32, %arg1: i32) -> (i32, i32) {
    %c0_i32 = arith.constant 0 : i32
    %c0_i32_0 = arith.constant 0 : i32
    %c0_i32_1 = arith.constant 0 : i32
    return %c0_i32, %c0_i32_0 : i32, i32
  }
  func.func @transform_6(%arg0: i32, %arg1: i32) -> (i32, i32) {
    %c0_i32 = arith.constant 0 : i32
    %c0_i32_0 = arith.constant 0 : i32
    %c0_i32_1 = arith.constant 0 : i32
    return %c0_i32, %c0_i32_0 : i32, i32
  }
  func.func @transform_7(%arg0: i32, %arg1: i32) -> (i32, i32) {
    %c0_i32 = arith.constant 0 : i32
    %c0_i32_0 = arith.constant 0 : i32
    %c0_i32_1 = arith.constant 0 : i32
    return %c0_i32, %c0_i32_0 : i32, i32
  }
  func.func @transform_8(%arg0: i32, %arg1: i32) -> (i32, i32, i32) {
    %c0_i32 = arith.constant 0 : i32
    %c0_i32_0 = arith.constant 0 : i32
    return %arg0, %arg1, %c0_i32 : i32, i32, i32
  }
}

</mosaic_0001>

<bundles_post_ra>
// kernel: tpu_custom_call.1
= control target key start
LH: loop header
LB: loop body
LE: loop exit
PB: predicated region body
PF: predicated region fallthrough
CT: control target
= control target key end

     0   :  { %s2261_s0 = inlined_call_operand.hbm [shape: bf16[2,8,32], index: 0, kind: input, shape index: {}]   ;;  %s2262_s1 = inlined_call_operand.hbm [shape: bf16[2,8,32], index: 1, kind: input, shape index: {}]   ;;  %s2263_s2 = inlined_call_operand.hbm [shape: bf16[32,32], index: 2, kind: input, shape index: {}]   ;;  %s2264_s3 = inlined_call_operand.hbm [shape: bf16[32,64], index: 3, kind: input, shape index: {}]   ;;  %s2265_s4 = inlined_call_operand.hbm [shape: bf16[32,32], index: 4, kind: input, shape index: {}]   ;;  %s2266_s5 = inlined_call_operand.vmem [shape: f32[1,32], index: 5, kind: input, shape index: {}]   ;;  %s2267_s6 = inlined_call_operand.vmem [shape: f32[1,64], index: 6, kind: input, shape index: {}]   ;;  %s2268_s7 = inlined_call_operand.vmem [shape: f32[1,32], index: 7, kind: input, shape index: {}]   ;;  %s2269_s8 = inlined_call_operand.hbm [shape: f32[2,8,32], index: 8, kind: output, shape index: {}]  }
   0x1   :  { %2274 = sst [smem:[#allocation20_spill]] %s2261_s0 }
   0x2   :  { %2275 = sst [smem:[#allocation21_spill]] %s2263_s2 }
   0x3   :  { %2276 = sst [smem:[#allocation22_spill]] %s2264_s3 }
   0x4   :  { %2277 = sst [smem:[#allocation23_spill]] %s2265_s4 }
   0x5   :  { %13 = vsyncpa [#allocation4], 0 }
   0x6   :  { %15 = vsyncpa [#allocation4 + $0x1], 0 }
   0x7   :  { %16 = vsyncpa [#allocation7], 0 }
   0x8   :  { %18 = vsyncpa [#allocation7 + $0x1], 0 }
   0x9   :  { %19 = vsyncpa [#allocation10], 0 }
   0xa   :  { %20 = vsyncpa [#allocation5], 0 }
   0xb   :  { %22 = vsyncpa [#allocation5 + $0x1], 0  ;;  %s1938_s27 = smov 0   ;;  %s1940_s28 = smov 0  }
   0xc   :  { %s1942_s29 = smov 0   ;;  %s1944_s30 = smov 0  }
   0xd   :  { %s1946_s9 = smov 0   ;;  %s1948_s10 = smov 0  }
   0xe LB: > { %s1969_s11 = sadd.s32 4294967295, %s1874_s10   ;;  %s1357_s12 = sadd.s32 4294967294, %s1874_s10   ;;  %s1874_s10 = sphi %s1948_s10, %s28_s10   ;;  %s1870_s9 = sphi %s1946_s9, %s2304_s9   ;;  %s1866_s30 = sphi %s1944_s30, %s2303_s30   ;;  %s1862_s29 = sphi %s1942_s29, %s2302_s29   ;;  %s1858_s28 = sphi %s1940_s28, %s2301_s28   ;;  %s1854_s27 = sphi %s1938_s27, %s2300_s27  }
   0xf   : > { %p62_p0 = scmp.ne.s32.totalorder %s1858_s28, %s1854_s27  ;;  %p2270_p1 = scmp.eq.s32.totalorder %s1969_s11, 0 }
  0x10   : > { %p246_p3 = scmp.eq.s32.totalorder %s1357_s12, 1  ;;  %p1358_p5 = scmp.ge.s32.totalorder %s1874_s10, 1 }
  0x11   : > { %p1978_p4 = por %p2270_p1, %p62_p0  ;;  %p253_p7 = scmp.lt.s32.totalorder %s1874_s10, 3 }
  0x12   : > { %p1983_p6 = por %p246_p3, %p62_p0  ;;  %s1876_s16 = smov [#allocation8]  }
  0x13   : > { %s2278_s13 = scalar_select %p1978_p4, 1, 0 }
  0x14   : > { %s2279_s14 = scalar_select %p1983_p6, 1, 0 }
  0x15   : > { %p1988_p8 = pnand %p1358_p5, %p253_p7  ;;  %s265_s17 = sshll.u32 %s1876_s16, 4  ;;  %s266_s17 = int_to_ptr.vmem [resolvable:$true] %s265_s17 }
  0x16   : > { %2280 = sst [smem:[#allocation18_spill]] %s2279_s14  ;;  %s1877_s19 = smov [#allocation9]  }
  0x17   : > { %p1536_p9 = pneg %p1988_p8  ;;  %s278_s20 = sshll.u32 %s1877_s19, 4  ;;  %s279_s20 = int_to_ptr.vmem [resolvable:$true] %s278_s20 }
  0x18   : > { %s1878_s21 = smov [#allocation11]   ;;  %s1659_s23 = scalar_lea.vmem %s266_s17, 256 }
  0x19   : > { %p1997_p11 = pnand %p1536_p9, %p2270_p1  ;;  %s291_s22 = sshll.u32 %s1878_s21, 4  ;;  %s292_s22 = int_to_ptr.vmem [resolvable:$true] %s291_s22 }
  0x1a   : > { %p1660_p13 = scmp.ne.s32.totalorder %s266_s17, %s1659_s23  ;;  %p1667_p5 = scmp.lt.s32.totalorder %s266_s17, %s266_s17 }
  0x1b   : > { %p1650_p12 = pneg %p1997_p11  ;;  %p1668_p7 = scmp.lt.s32.totalorder %s1659_s23, %s1659_s23 }
  0x1d   : > { %p1662_p0 = pnand %p1660_p13, %p1650_p12  ;;  %p1669_p9 = por %p1668_p7, %p1667_p5 }
  0x1f   : > { %p1663_p3 = pneg %p1662_p0 }
  0x21   : > { %p1670_p10 = pnand %p1669_p9, %p1663_p3 }
  0x23   : > { %1673 = shalt.err (!%p1670_p10)
}
  0x24   : > { %s1879_s24 = smov 64   ;;  %s1880_s25 = smov 4  }
  0x25   : > { %s2283_s2 = sld [smem:[#allocation21_spill]]  ;;  %s1685_s16 = scalar_lea.vmem %s279_s20, 256 }
  0x26   : > { %p1686_p1 = scmp.ne.s32.totalorder %s279_s20, %s1685_s16  ;;  %p1693_p2 = scmp.lt.s32.totalorder %s279_s20, %s279_s20 }
  0x27   : > { %p1694_p6 = scmp.lt.s32.totalorder %s1685_s16, %s1685_s16 }
  0x28   : > { %p1688_p13 = pnand %p1686_p1, %p1650_p12 }
  0x29   : > { %p1695_p5 = por %p1694_p6, %p1693_p2 }
  0x2a   : > { %p1689_p0 = pneg %p1688_p13 }
  0x2b   : > { %1539 = dma.hbm_to_vmem [thread:$0]  (!%p1997_p11), %s2283_s2, 256, %s266_s17, [#allocation7], %s1879_s24, %s1879_s24, %s1880_s25  }
  0x2c   : > { %p1696_p3 = pnand %p1695_p5, %p1689_p0 }
  0x2e   : > { %1699 = shalt.err (!%p1696_p3)
}
  0x2f   : > { %s2284_s3 = sld [smem:[#allocation22_spill]]  ;;  %s1711_s17 = scalar_lea.vmem %s292_s22, 256 }
  0x30   : > { %p1712_p10 = scmp.ne.s32.totalorder %s292_s22, %s1711_s17  ;;  %p1719_p9 = scmp.lt.s32.totalorder %s292_s22, %s292_s22 }
  0x31   : > { %p1720_p13 = scmp.lt.s32.totalorder %s1711_s17, %s1711_s17 }
  0x32   : > { %p1714_p7 = pnand %p1712_p10, %p1650_p12 }
  0x33   : > { %p1721_p4 = por %p1720_p13, %p1719_p9 }
  0x34   : > { %p1715_p1 = pneg %p1714_p7 }
  0x35   : > { %1542 = dma.hbm_to_vmem [thread:$0]  (!%p1997_p11), %s2284_s3, 256, %s279_s20, [#allocation10], %s1879_s24, %s1879_s24, %s1880_s25  }
  0x36   : > { %p1722_p2 = pnand %p1721_p4, %p1715_p1 }
  0x38   : > { %1725 = shalt.err (!%p1722_p2)
}
  0x39   : > { %s2285_s4 = sld [smem:[#allocation23_spill]]  ;;  %s49_s20 = sadd.s32 1, %s1862_s29 }
  0x3a   : > { %s40_s12 = sadd.s32 1, %s1870_s9  ;;  %p56_p4 = scmp.ne.s32.totalorder %s1862_s29, %s1858_s28 }
  0x3b   : > { %p42_p6 = scmp.ge.s32.totalorder %s40_s12, 2  ;;  %p57_p12 = scmp.eq.s32.totalorder %s1874_s10, 0 }
  0x3c   : > { %p2286_p0 = scmp.eq.s32.totalorder %s1969_s11, 1  ;;  %p1560_p3 = scmp.lt.s32.totalorder %s1874_s10, 2 }
  0x3d   : > { %s2306_s12 = smov (%p42_p6, %s40_s12), 0  ;;  %p58_p10 = por %p57_p12, %p56_p4 }
  0x3e   : > { %p2034_p5 = por %p2286_p0, %p56_p4  ;;  %2288 = sst [smem:[#allocation19_spill]] %s2306_s12 }
  0x3f   : > { %1545 = dma.hbm_to_vmem [thread:$0]  (!%p1997_p11), %s2285_s4, 256, %s292_s22, [#allocation10], %s1879_s24, %s1879_s24, %s1880_s25  }
  0x40   : > { %s314_s16 = sand.u32 1, %s1862_s29   ;;  %s44_s19 = ssub.s32 %s1870_s9, %s2306_s12 }
  0x41   : > { %p47_p11 = scmp.eq.s32.totalorder %s44_s19, 0  ;;  %s1363_s22 = sshll.u32 %s314_s16, 2 }
  0x42   : > { %s1364_s24 = sshll.u32 %s1870_s9, 6  ;;  %s2289_s0 = sld [smem:[#allocation20_spill]] }
  0x43   : > { %s2046_s25 = scalar_select %p47_p11, %s1862_s29, %s49_s20  }
  0x44   : > { %s318_s26 = scalar_lea.vmem [#allocation3], %s1363_s22  ;;  %p2053_p7 = pnand %p1560_p3, %p58_p10 }
  0x45   : > { %s326_s2 = sshll.u32 %s318_s26, 4  ;;  %s2060_s19 = scalar_lea.hbm %s2262_s1, %s1364_s24  ;;  %s327_s2 = int_to_ptr.vmem [resolvable:$true] %s326_s2 }
  0x46   : > { %s333_s20 = sand.u32 1, %s1874_s10   ;;  %s315_s12 = scalar_lea.sflag [#allocation4], %s314_s16 }
  0x47   : > { %p1728_p1 = pneg %p2053_p7  ;;  %s1739_s21 = scalar_lea.vmem %s327_s2, 64 }
  0x48   : > { %s324_s23 = scalar_lea.hbm %s2289_s0, %s1364_s24  ;;  %p1740_p9 = scmp.ne.s32.totalorder %s327_s2, %s1739_s21 }
  0x49   : > { %s1881_s17 = smov [#allocation3]  }
  0x4a   : > { %p1742_p13 = pnand %p1740_p9, %p1728_p1  ;;  %s1744_s26 = sshll.u32 %s1881_s17, 4  ;;  %s1745_s26 = int_to_ptr.vmem [resolvable:$false] %s1744_s26 }
  0x4b   : > { %s1746_s0 = scalar_lea.vmem %s1745_s26, 128  ;;  %p1747_p4 = scmp.lt.s32.totalorder %s327_s2, %s1745_s26 }
  0x4c   : > { %p1743_p2 = pneg %p1742_p13  ;;  %p1748_p6 = scmp.lt.s32.totalorder %s1746_s0, %s1739_s21 }
  0x4e   : > { %p1749_p12 = por %p1748_p6, %p1747_p4 }
  0x50   : > { %p1750_p0 = pnand %p1749_p12, %p1743_p2 }
  0x52   : > { %1753 = shalt.err (!%p1750_p0)
}
  0x53   : > { %1549 = dma.hbm_to_vmem [thread:$0]  (!%p2053_p7), %s324_s23, 64, %s327_s2, %s315_s12  }
  0x54   : > { %s337_s4 = scalar_lea.vmem [#allocation6], %s1363_s22  ;;  %s334_s16 = scalar_lea.sflag [#allocation7], %s333_s20 }
  0x55   : > { %s344_s14 = sshll.u32 %s337_s4, 4  ;;  %s1882_s17 = smov [#allocation6]   ;;  %s345_s14 = int_to_ptr.vmem [resolvable:$true] %s344_s14 }
  0x56   : > { %s1767_s24 = scalar_lea.vmem %s345_s14, 64  ;;  %s1772_s26 = sshll.u32 %s1882_s17, 4  ;;  %s1773_s26 = int_to_ptr.vmem [resolvable:$false] %s1772_s26 }
  0x57   : > { %p1768_p3 = scmp.ne.s32.totalorder %s345_s14, %s1767_s24  ;;  %s1774_s0 = scalar_lea.vmem %s1773_s26, 128 }
  0x58   : > { %p1775_p9 = scmp.lt.s32.totalorder %s345_s14, %s1773_s26  ;;  %p1776_p13 = scmp.lt.s32.totalorder %s1774_s0, %s1767_s24 }
  0x59   : > { %p1770_p10 = pnand %p1768_p3, %p1728_p1 }
  0x5a   : > { %p1777_p2 = por %p1776_p13, %p1775_p9 }
  0x5b   : > { %p1771_p11 = pneg %p1770_p10 }
  0x5d   : > { %p1778_p4 = pnand %p1777_p2, %p1771_p11 }
  0x5f   : > { %1781 = shalt.err (!%p1778_p4)
}
  0x60   : > { %1552 = dma.hbm_to_vmem [thread:$0]  (!%p2053_p7), %s2060_s19, 64, %s345_s14, %s334_s16  }
  0x61   : > { %353 = sbr.rel (%p1988_p8) target bundleno = 2174 (0x87e), region = 52  ;;  %s2079_s2 = sand.u32 (!%p1988_p8), 1, %s1858_s28  }
  0x62   : > { %s1368_s12 = sshll.u32 (!%p1988_p8), %s2079_s2, 2  ;;  %s356_s22 = scalar_lea.sflag (!%p1988_p8), [#allocation4], %s2079_s2 }
  0x63   : > { %s2083_s23 = scalar_lea.vmem (!%p1988_p8), [#allocation3], %s1368_s12  ;;  %p2291_p1 = scmp.ne.s32.totalorder (!%p1988_p8), %s2278_s13, 0 }
  0x66   : > { %1833 = dma.done.wait (%p2291_p1), %s356_s22, 64  }
  0x67   : > { %1835 = vsyncadd (%p2291_p1), %s356_s22, 4294967232  ;;  %s364_s3 = sand.u32 1, %s1969_s11   ;;  %s368_s19 = scalar_lea.vmem [#allocation6], %s1368_s12 }
  0x68   : > { %s365_s15 = scalar_lea.sflag [#allocation7], %s364_s3 }
  0x69   : > { %1837 = dma.done.wait (%p2291_p1), %s365_s15, 64  }
  0x6a   : > { %1839 = vsyncadd (%p2291_p1), %s365_s15, 4294967232  ;;  %p2292_p8 = scmp.eq.s32.totalorder %s1969_s11, 0 }
  0x6c   : > { %1841 = dma.done.wait (%p2292_p8), [#allocation7], 256   ;;  %p2293_p7 = pmov %p2292_p8 }
  0x6e   : > { %1843 = vsyncadd (%p2293_p7), [#allocation7], 4294967040  ;;  %p2294_p6 = pmov %p2293_p7 }
  0x70   : > { %1845 = dma.done.wait (%p2294_p6), [#allocation10], 512   ;;  %p2295_p12 = pmov %p2294_p6 }
  0x71   : > { %v1883_v0 = vmov 0.0   ;;  %vm1884_vm0 = vmmov 0   ;;  %v1627_v1 = vld [vmem:[#allocation9 + $0x8] sm:$0xff]   ;;  %v1628_v2 = vld [vmem:[#allocation9] sm:$0xff]   ;;  %v1629_v3 = vld [vmem:[#allocation8 + $0x8] sm:$0xff]   ;;  %vm447_vm1 = vcmask 261120  }
  0x72   : > { %1847 = vsyncadd (%p2295_p12), [#allocation10], 4294966784  ;;  %1430 = vmatprep.subr.bf16.mxu0 %v1883_v0  ;;  %1434 = vmatprep.mubr.msk.bf16.mxu0 %vm1884_vm0, %v1883_v0  ;;  %v1630_v4 = vld [vmem:[#allocation8] sm:$0xff]   ;;  %v423_v5 = vld [vmem:[%s368_s19] sm:$0xf]  ;;  %vm492_vm2 = vcmask 519168  }
  0x73   : > { %1438 = vmatprep.subr.bf16.mxu1 %v1883_v0  ;;  %1442 = vmatprep.mubr.msk.bf16.mxu1 %vm1884_vm0, %v1883_v0  ;;  %v494_v6 = vld [vmem:[%s2083_s23] sm:$0xf]  ;;  %v1374_v7 = vld [vmem:[%s2267_s6] ss:$0 sm:$0xff]  ;;  %vm571_vm3 = vcmask 64512   ;;  %s1885_s4 = smov 120  }
  0x74   : > { %1431 = vmatpush3.bf16.msra.mxu0 %v1627_v1  ;;  %1439 = vmatpush3.bf16.msra.mxu1 %v1629_v3  ;;  %v1378_v17 = vld [vmem:[%s2266_s5] ss:$0 sm:$0xff]  ;;  %s1886_s14 = smov 96   ;;  %vm637_vm4 = vcmask 1043456   ;;  %s1887_s16 = smov 88  }
  0x75   : > { %1432 = vmatprep.subr.bf16.mxu0 %v1883_v0  ;;  %1440 = vmatprep.subr.bf16.mxu1 %v1883_v0  ;;  %s1888_s24 = smov 112   ;;  %v683_v40 = vld [vmem:[#allocation11] sm:$0xf]  ;;  %s1889_s17 = smov 80  }
  0x76   : > { %v688_v41 = vsel %vm637_vm4, %v683_v40, 0  ;;  %s1890_s26 = smov 104   ;;  %s1891_s0 = smov 72  }
  0x77   : > { %s1373_s23 = sshll.u32 %s2079_s2, 3  ;;  %s1397_s3 = sshll.u32 %s1866_s30, 7 }
  0x78   : > { %1433 = vmatpush3.bf16.msra.mxu0 %v1628_v2  ;;  %1441 = vmatpush3.bf16.msra.mxu1 %v1630_v4  ;;  %s417_s15 = scalar_lea.vmem [#allocation12], %s1373_s23  ;;  %s2212_s20 = scalar_lea.hbm %s2269_s8, %s1397_s3 }
  0x79   : > { %1446 = vmatprep.subr.bf16.mxu0 %v1883_v0  ;;  %1452 = vmatprep.subr.bf16.mxu1 %v1883_v0  ;;  %s1225_s19 = sshll.u32 %s417_s15, 4  ;;  %s1211_s21 = scalar_lea.sflag [#allocation5], %s2079_s2  ;;  %s2214_s19 = int_to_ptr.vmem [resolvable:$true] %s1225_s19 }
  0x7a   : > { %s1782_s30 = scalar_lea.vmem %s2214_s19, 128 }
  0x7b   : > { %1435 = vmatmul.mubr.msk.bf16.vlgmr.msra.gmra.mxu0 %vm447_vm1, %v423_v5  ;;  %1443 = vmatmul.mubr.msk.bf16.vlgmr.msra.gmra.mxu1 %vm447_vm1, %v494_v6  ;;  %p1783_p0 = scmp.ne.s32.totalorder %s2214_s19, %s1782_s30 }
  0x7c   : > { %1448 = vmatprep.mubr.msk.bf16.mxu0 %vm1884_vm0, %v1883_v0  ;;  %1454 = vmatprep.mubr.msk.bf16.mxu1 %vm1884_vm0, %v1883_v0 }
  0x7d   : > { %p1784_p3 = pnand %p1783_p0, %p2034_p5 }
  0x7f   : > { %p1785_p10 = pneg %p1784_p3 }
 0x13b   : > { %v485_v8 = vpop.f32.mrf.mxu0  ;;  %v556_v12 = vpop.f32.mrf.mxu1 }
 0x13c   : > { %v486_v9 = vadd.f32 %v1374_v7, %v485_v8  ;;  %v557_v19 = vadd.f32 %v1378_v17, %v556_v12  ;;  %v843_v7 = vld [vmem:[#allocation11 + $0x4] sm:$0xf] }
 0x13d   : > { %v1436_v10 = vpop.f32.mrf.mxu0  ;;  %v1444_v14 = vpop.f32.mrf.mxu1  ;;  %v848_v8 = vsel %vm637_vm4, %v843_v7, 0 }
 0x13e   : > { %v491_v11 = vpack.c.bf16 %v486_v9, %v486_v9  ;;  %v2128_v23 = vpack.c.bf16 %v557_v19, %v557_v19 }
 0x13f   : > { %v488_v13 = vpop.f32.mrf.mxu0  ;;  %v559_v16 = vpop.f32.mrf.mxu1 }
 0x140   : > { %493 = vst.msk [vmem:[#allocation2] sm:$0xf] %vm492_vm2, %v491_v11 }
 0x141   : > { %v1437_v15 = vpop.f32.mrf.mxu0  ;;  %v1445_v18 = vpop.f32.mrf.mxu1 }
 0x147   : > { %v563_v20 = vld [vmem:[#allocation2] sm:$0xf] }
 0x148   : > { %v576_v21 = vsel %vm571_vm3, %v563_v20, 0  ;;  %v2126_v22 = vcombine.low %v563_v20, %v563_v20 }
 0x149   : > { %1447 = vmatpush3.bf16.xpose.msra.mxu0 %v576_v21 }
 0x14a   : > { %734 = vrot.lane.b32.xlu1 %v2126_v22, %s1885_s4  ;;  %1458 = vmatprep.subr.bf16.mxu0 %v1883_v0 }
 0x14e   : > { %732 = vrot.lane.b32.xlu1 %v2128_v23, %s1885_s4  ;;  %s1892_s4 = smov [#allocation12]  }
 0x150   : > { %1449 = vmatmul.mubr.msk.bf16.vlgmr.msra.gmra.mxu0 %vm571_vm3, %v2128_v23 }
 0x151   : > { %1460 = vmatprep.mubr.msk.bf16.mxu0 %vm1884_vm0, %v1883_v0  ;;  %1459 = vmatpush3.bf16.msra.mxu0 %v688_v41  ;;  %v1002_v41 = vld [vmem:[#allocation11 + $0x8] sm:$0xf] }
 0x152   : > { %1470 = vmatprep.subr.bf16.mxu0 %v1883_v0 }
 0x1bc   : > { %v735_v35 = vpop.permute.xlu1 %734 }
 0x1bd   : > { %v740_v38 = vsel %vm571_vm3, %v735_v35, 0 }
 0x1c0   : > { %v733_v39 = vpop.permute.xlu1 %732 }
 0x210   : > { %v612_v24 = vpop.f32.mrf.mxu0 }
 0x211   : > { %v618_v25 = vsel %vm571_vm3, %v612_v24, -inf }
 0x212   : > { %619 = vmax.xlane.f32.xlu0 %v618_v25  ;;  %v1450_v26 = vpop.f32.mrf.mxu0 }
 0x214   : > { %v615_v27 = vpop.f32.mrf.mxu0 }
 0x216   : > { %v1451_v28 = vpop.f32.mrf.mxu0 }
 0x228   : > { %632 = vrot.lane.b32.xlu0 %v2126_v22, %s1886_s14  ;;  %s1786_s14 = sshll.u32 %s1892_s4, 4  ;;  %s1787_s14 = int_to_ptr.vmem [resolvable:$false] %s1786_s14 }
 0x229   : > { %p1789_p11 = scmp.lt.s32.totalorder %s2214_s19, %s1787_s14 }
 0x29b   : > { %v620_v29 = vpop.xlane.xlu0 %619 }
 0x29c   : > { %v621_v30 = vsub.f32 %v612_v24, %v620_v29 }
 0x29e   : > { %v622_v31 = vmul.f32 1.442695, %v621_v30 }
 0x29f   : > { %v633_v32 = vpop.permute.xlu0 %632 }
 0x2a0   : > { %1632 = vpow2.f32 %v622_v31  ;;  %v639_v33 = vsel %vm637_vm4, %v633_v32, 0 }
 0x2a1   : > { %1453 = vmatpush3.bf16.msra.mxu1 %v639_v33 }
 0x2a2   : > { %1464 = vmatprep.subr.bf16.mxu1 %v1883_v0 }
 0x2ad   : > { %v1633_v34 = vpop.eup %1632 }
 0x2ae   : > { %v624_v36 = vsel %vm571_vm3, %v1633_v34, 0.0  ;;  %v628_v37 = vpack.c.bf16 %v1633_v34, %v1633_v34  ;;  %v1382_v34 = vld [vmem:[%s2268_s7] ss:$0 sm:$0xff] }
 0x2af   : > { %625 = vadd.xlane.f32.xlu1 %v624_v36 }
 0x2b0   : > { %1455 = vmatmul.mubr.msk.bf16.vlgmr.msra.gmra.mxu1 %vm571_vm3, %v628_v37 }
 0x2b1   : > { %1465 = vmatpush3.bf16.xpose.msra.mxu1 %v740_v38  ;;  %1466 = vmatprep.mubr.msk.bf16.mxu1 %vm1884_vm0, %v1883_v0 }
 0x2b2   : > { %1476 = vmatprep.subr.bf16.mxu1 %v1883_v0 }
 0x2b8   : > { %1467 = vmatmul.mubr.msk.bf16.vlgmr.msra.gmra.mxu1 %vm571_vm3, %v733_v39 }
 0x2b9   : > { %1478 = vmatprep.mubr.msk.bf16.mxu1 %vm1884_vm0, %v1883_v0  ;;  %1477 = vmatpush3.bf16.msra.mxu1 %v848_v8 }
 0x2ba   : > { %1488 = vmatprep.subr.bf16.mxu1 %v1883_v0 }
 0x2c0   : > { %793 = vrot.lane.b32.xlu1 %v2126_v22, %s1887_s16  ;;  %s1788_s16 = scalar_lea.vmem %s1787_s14, 256 }
 0x2c1   : > { %p1790_p9 = scmp.lt.s32.totalorder %s1788_s16, %s1782_s30 }
 0x2c3   : > { %p1791_p13 = por %p1790_p9, %p1789_p11 }
 0x2c4   : > { %891 = vrot.lane.b32.xlu1 %v2128_v23, %s1888_s24 }
 0x2c5   : > { %p1792_p2 = pnand %p1791_p13, %p1785_p10 }
 0x338   : > { %v626_v42 = vpop.xlane.xlu1 %625 }
 0x339   : > { %1634 = vrcp.f32 %v626_v42  ;;  %v1007_v42 = vsel %vm637_vm4, %v1002_v41, 0 }
 0x33c   : > { %v794_v46 = vpop.permute.xlu1 %793 }
 0x33d   : > { %v799_v50 = vsel %vm637_vm4, %v794_v46, 0 }
 0x340   : > { %v892_v2 = vpop.permute.xlu1 %891 }
 0x346   : > { %v1635_v43 = vpop.eup %1634 }
 0x370   : > { %v675_v44 = vpop.f32.mrf.mxu1 }
 0x371   : > { %v681_v45 = vmul.f32 %v1635_v43, %v675_v44 }
 0x372   : > { %v1456_v47 = vpop.f32.mrf.mxu1 }
 0x373   : > { %v682_v48 = vpack.c.bf16 %v681_v45, %v681_v45 }
 0x374   : > { %v678_v49 = vpop.f32.mrf.mxu1 }
 0x375   : > { %1461 = vmatmul.mubr.msk.bf16.vlgmr.msra.gmra.mxu0 %vm571_vm3, %v682_v48 }
 0x376   : > { %1471 = vmatpush3.bf16.msra.mxu0 %v799_v50  ;;  %v1457_v51 = vpop.f32.mrf.mxu1  ;;  %1472 = vmatprep.mubr.msk.bf16.mxu0 %vm1884_vm0, %v1883_v0 }
 0x377   : > { %1482 = vmatprep.subr.bf16.mxu0 %v1883_v0 }
 0x378   : > { %v776_v52 = vpop.f32.mrf.mxu1 }
 0x379   : > { %v782_v53 = vsel %vm571_vm3, %v776_v52, -inf }
 0x37a   : > { %783 = vmax.xlane.f32.xlu0 %v782_v53  ;;  %v1468_v54 = vpop.f32.mrf.mxu1 }
 0x37c   : > { %v779_v55 = vpop.f32.mrf.mxu1 }
 0x37e   : > { %v1469_v56 = vpop.f32.mrf.mxu1 }
 0x390   : > { %893 = vrot.lane.b32.xlu0 %v2126_v22, %s1888_s24 }
 0x403   : > { %v784_v57 = vpop.xlane.xlu0 %783 }
 0x404   : > { %v785_v58 = vsub.f32 %v776_v52, %v784_v57 }
 0x406   : > { %v786_v59 = vmul.f32 1.442695, %v785_v58 }
 0x407   : > { %v894_v61 = vpop.permute.xlu0 %893 }
 0x408   : > { %1636 = vpow2.f32 %v786_v59  ;;  %v899_v1 = vsel %vm571_vm3, %v894_v61, 0 }
 0x415   : > { %v1637_v60 = vpop.eup %1636 }
 0x416   : > { %v788_v62 = vsel %vm571_vm3, %v1637_v60, 0.0  ;;  %v792_v63 = vpack.c.bf16 %v1637_v60, %v1637_v60 }
 0x417   : > { %789 = vadd.xlane.f32.xlu1 %v788_v62 }
 0x418   : > { %1473 = vmatmul.mubr.msk.bf16.vlgmr.msra.gmra.mxu0 %vm571_vm3, %v792_v63  ;;  %v1161_v63 = vld [vmem:[#allocation11 + $0xc] sm:$0xf] }
 0x419   : > { %1483 = vmatpush3.bf16.xpose.msra.mxu0 %v899_v1  ;;  %1484 = vmatprep.mubr.msk.bf16.mxu0 %vm1884_vm0, %v1883_v0 }
 0x41a   : > { %1494 = vmatprep.subr.bf16.mxu0 %v1883_v0 }
 0x420   : > { %1485 = vmatmul.mubr.msk.bf16.vlgmr.msra.gmra.mxu0 %vm571_vm3, %v892_v2 }
 0x421   : > { %1496 = vmatprep.mubr.msk.bf16.mxu0 %vm1884_vm0, %v1883_v0  ;;  %1495 = vmatpush3.bf16.msra.mxu0 %v1007_v42 }
 0x422   : > { %1506 = vmatprep.subr.bf16.mxu0 %v1883_v0 }
 0x428   : > { %952 = vrot.lane.b32.xlu1 %v2126_v22, %s1889_s17 }
 0x42c   : > { %1050 = vrot.lane.b32.xlu1 %v2128_v23, %s1890_s26 }
 0x435   : > { %v724_v3 = vpop.f32.mrf.mxu0 }
 0x436   : > { %v730_v35 = vadd.f32 %v1382_v34, %v724_v3 }
 0x437   : > { %v1462_v4 = vpop.f32.mrf.mxu0 }
 0x439   : > { %v727_v5 = vpop.f32.mrf.mxu0 }
 0x43b   : > { %v1463_v6 = vpop.f32.mrf.mxu0 }
 0x4a0   : > { %v790_v9 = vpop.xlane.xlu1 %789 }
 0x4a1   : > { %1638 = vrcp.f32 %v790_v9 }
 0x4a4   : > { %v953_v13 = vpop.permute.xlu1 %952 }
 0x4a5   : > { %v958_v17 = vsel %vm637_vm4, %v953_v13, 0 }
 0x4a8   : > { %v1051_v33 = vpop.permute.xlu1 %1050 }
 0x4ae   : > { %v1639_v10 = vpop.eup %1638 }
 0x4d8   : > { %v835_v11 = vpop.f32.mrf.mxu0 }
 0x4d9   : > { %v841_v12 = vmul.f32 %v1639_v10, %v835_v11 }
 0x4da   : > { %v1474_v14 = vpop.f32.mrf.mxu0 }
 0x4db   : > { %v842_v15 = vpack.c.bf16 %v841_v12, %v841_v12 }
 0x4dc   : > { %v838_v16 = vpop.f32.mrf.mxu0 }
 0x4dd   : > { %1479 = vmatmul.mubr.msk.bf16.vlgmr.msra.gmra.mxu1 %vm571_vm3, %v842_v15 }
 0x4de   : > { %1489 = vmatpush3.bf16.msra.mxu1 %v958_v17  ;;  %v1475_v18 = vpop.f32.mrf.mxu0  ;;  %1490 = vmatprep.mubr.msk.bf16.mxu1 %vm1884_vm0, %v1883_v0 }
 0x4df   : > { %1500 = vmatprep.subr.bf16.mxu1 %v1883_v0 }
 0x4e0   : > { %v935_v19 = vpop.f32.mrf.mxu0 }
 0x4e1   : > { %v941_v20 = vsel %vm571_vm3, %v935_v19, -inf }
 0x4e2   : > { %942 = vmax.xlane.f32.xlu0 %v941_v20  ;;  %v1486_v21 = vpop.f32.mrf.mxu0 }
 0x4e4   : > { %v938_v23 = vpop.f32.mrf.mxu0 }
 0x4e6   : > { %v1487_v24 = vpop.f32.mrf.mxu0 }
 0x4f8   : > { %1052 = vrot.lane.b32.xlu0 %v2126_v22, %s1890_s26 }
 0x56b   : > { %v943_v25 = vpop.xlane.xlu0 %942 }
 0x56c   : > { %v944_v26 = vsub.f32 %v935_v19, %v943_v25 }
 0x56e   : > { %v945_v27 = vmul.f32 1.442695, %v944_v26 }
 0x56f   : > { %v1053_v29 = vpop.permute.xlu0 %1052 }
 0x570   : > { %1640 = vpow2.f32 %v945_v27  ;;  %v1058_v32 = vsel %vm571_vm3, %v1053_v29, 0 }
 0x57d   : > { %v1641_v28 = vpop.eup %1640 }
 0x57e   : > { %v947_v30 = vsel %vm571_vm3, %v1641_v28, 0.0  ;;  %v951_v31 = vpack.c.bf16 %v1641_v28, %v1641_v28 }
 0x57f   : > { %948 = vadd.xlane.f32.xlu1 %v947_v30 }
 0x580   : > { %1491 = vmatmul.mubr.msk.bf16.vlgmr.msra.gmra.mxu1 %vm571_vm3, %v951_v31 }
 0x581   : > { %1501 = vmatpush3.bf16.xpose.msra.mxu1 %v1058_v32  ;;  %1502 = vmatprep.mubr.msk.bf16.mxu1 %vm1884_vm0, %v1883_v0 }
 0x582   : > { %1512 = vmatprep.subr.bf16.mxu1 %v1883_v0 }
 0x588   : > { %1503 = vmatmul.mubr.msk.bf16.vlgmr.msra.gmra.mxu1 %vm571_vm3, %v1051_v33 }
 0x589   : > { %1514 = vmatprep.mubr.msk.bf16.mxu1 %vm1884_vm0, %v1883_v0 }
 0x590   : > { %1111 = vrot.lane.b32.xlu1 %v2126_v22, %s1891_s0 }
 0x59d   : > { %v884_v36 = vpop.f32.mrf.mxu1 }
 0x59e   : > { %v890_v37 = vadd.f32 %v884_v36, %v730_v35 }
 0x59f   : > { %v1480_v38 = vpop.f32.mrf.mxu1 }
 0x5a1   : > { %v887_v39 = vpop.f32.mrf.mxu1 }
 0x5a3   : > { %v1481_v40 = vpop.f32.mrf.mxu1 }
 0x608   : > { %v949_v43 = vpop.xlane.xlu1 %948 }
 0x609   : > { %1642 = vrcp.f32 %v949_v43 }
 0x60c   : > { %v1112_v46 = vpop.permute.xlu1 %1111 }
 0x60d   : > { %v1117_v50 = vsel %vm637_vm4, %v1112_v46, 0 }
 0x616   : > { %v1643_v44 = vpop.eup %1642 }
 0x640   : > { %v994_v22 = vpop.f32.mrf.mxu1 }
 0x641   : > { %v1000_v45 = vmul.f32 %v1643_v44, %v994_v22 }
 0x642   : > { %v1492_v47 = vpop.f32.mrf.mxu1 }
 0x643   : > { %v1001_v48 = vpack.c.bf16 %v1000_v45, %v1000_v45 }
 0x644   : > { %v997_v49 = vpop.f32.mrf.mxu1 }
 0x645   : > { %1497 = vmatmul.mubr.msk.bf16.vlgmr.msra.gmra.mxu0 %vm571_vm3, %v1001_v48 }
 0x646   : > { %1507 = vmatpush3.bf16.msra.mxu0 %v1117_v50  ;;  %v1493_v51 = vpop.f32.mrf.mxu1  ;;  %1508 = vmatprep.mubr.msk.bf16.mxu0 %vm1884_vm0, %v1883_v0  ;;  %v1166_v0 = vsel %vm637_vm4, %v1161_v63, 0 }
 0x647   : > { %1513 = vmatpush3.bf16.msra.mxu1 %v1166_v0 }
 0x648   : > { %v1094_v52 = vpop.f32.mrf.mxu1 }
 0x649   : > { %v1100_v53 = vsel %vm571_vm3, %v1094_v52, -inf }
 0x64a   : > { %1101 = vmax.xlane.f32.xlu0 %v1100_v53  ;;  %v1504_v54 = vpop.f32.mrf.mxu1 }
 0x64c   : > { %v1097_v55 = vpop.f32.mrf.mxu1 }
 0x64e   : > { %v1505_v56 = vpop.f32.mrf.mxu1 }
 0x6d3   : > { %v1102_v57 = vpop.xlane.xlu0 %1101 }
 0x6d4   : > { %v1103_v58 = vsub.f32 %v1094_v52, %v1102_v57 }
 0x6d6   : > { %v1104_v59 = vmul.f32 1.442695, %v1103_v58 }
 0x6d8   : > { %1644 = vpow2.f32 %v1104_v59 }
 0x6e5   : > { %v1645_v60 = vpop.eup %1644 }
 0x6e6   : > { %v1106_v61 = vsel %vm571_vm3, %v1645_v60, 0.0  ;;  %v1110_v62 = vpack.c.bf16 %v1645_v60, %v1645_v60 }
 0x6e7   : > { %1107 = vadd.xlane.f32.xlu0 %v1106_v61 }
 0x6e8   : > { %1509 = vmatmul.mubr.msk.bf16.vlgmr.msra.gmra.mxu0 %vm571_vm3, %v1110_v62 }
 0x705   : > { %v1043_v1 = vpop.f32.mrf.mxu0 }
 0x706   : > { %v1049_v2 = vadd.f32 %v1043_v1, %v890_v37 }
 0x707   : > { %v1498_v3 = vpop.f32.mrf.mxu0 }
 0x709   : > { %v1046_v4 = vpop.f32.mrf.mxu0 }
 0x70b   : > { %v1499_v5 = vpop.f32.mrf.mxu0 }
 0x770   : > { %v1108_v6 = vpop.xlane.xlu0 %1107 }
 0x771   : > { %1646 = vrcp.f32 %v1108_v6 }
 0x77e   : > { %v1647_v7 = vpop.eup %1646 }
 0x7a8   : > { %v1153_v8 = vpop.f32.mrf.mxu0 }
 0x7a9   : > { %v1159_v9 = vmul.f32 %v1647_v7, %v1153_v8 }
 0x7aa   : > { %v1510_v10 = vpop.f32.mrf.mxu0 }
 0x7ab   : > { %v1160_v11 = vpack.c.bf16 %v1159_v9, %v1159_v9 }
 0x7ac   : > { %v1156_v12 = vpop.f32.mrf.mxu0 }
 0x7ad   : > { %1515 = vmatmul.mubr.msk.bf16.vlgmr.msra.gmra.mxu1 %vm571_vm3, %v1160_v11 }
 0x7ae   : > { %v1511_v13 = vpop.f32.mrf.mxu0 }
 0x86d   : > { %v1202_v14 = vpop.f32.mrf.mxu1 }
 0x86e   : > { %v1208_v15 = vadd.f32 %v1202_v14, %v1049_v2 }
 0x86f   : > { %v1516_v16 = vpop.f32.mrf.mxu1 }
 0x870   : > { %1209 = vst.msk [vmem:[%s417_s15] sm:$0xff] %vm447_vm1, %v1208_v15 }
 0x871   : > { %v1205_v17 = vpop.f32.mrf.mxu1 }
 0x872   : > { %1795 = shalt.err (!%p1792_p2)
}
 0x873   : > { %s1796_s24 = scalar_lea.hbm %s2212_s20, 128  ;;  %s1800_s26 = scalar_lea.hbm %s2269_s8, 256 }
 0x874   : > { %p1797_p4 = scmp.ne.s32.totalorder %s2212_s20, %s1796_s24  ;;  %p1801_p7 = scmp.lt.s32.totalorder %s2212_s20, %s2269_s8 }
 0x875   : > { %p1802_p6 = scmp.lt.s32.totalorder %s1800_s26, %s1796_s24 }
 0x876   : > { %p1798_p1 = pnand %p1797_p4, %p2034_p5 }
 0x877   : > { %p1803_p12 = por %p1802_p6, %p1801_p7 }
 0x878   : > { %p1799_p8 = pneg %p1798_p1 }
 0x87a   : > { %p1804_p0 = pnand %p1803_p12, %p1799_p8 }
 0x87c   : > { %1807 = shalt.err (!%p1804_p0)
}
 0x87d   : > { %1534 = dma.vmem_to_hbm [thread:$0]  (%p2034_p5), %s2214_s19, 128, %s2212_s20, %s1211_s21   ;;  %v1517_v18 = vpop.f32.mrf.mxu1 }
 0x87e PF: > { %s2296_s22 = sld [smem:[#allocation18_spill]]  ;;  %s1237_s23 = sand.u32 1, %s1854_s27  }
 0x87f   : > { %p2298_p10 = scmp.ge.s32.totalorder %s1874_s10, 2  ;;  %s1238_s3 = scalar_lea.sflag [#allocation5], %s1237_s23 }
 0x884   : > { %p2297_p3 = scmp.ne.s32.totalorder %s2296_s22, 0 }
 0x886   : > { %p1554_p11 = pnand %p2298_p10, %p2297_p3 }
 0x888   : > { %p1555_p9 = pneg %p1554_p11 }
 0x88a   : > { %1849 = dma.done.wait (%p1555_p9), %s1238_s3, 128  }
 0x88b   : > { %1851 = vsyncadd (%p1555_p9), %s1238_s3, 4294967168  ;;  %s28_s10 = sadd.s32 1, %s1874_s10   ;;  %s2299_s18 = sld [smem:[#allocation19_spill]] }
 0x88c   : > { %p25_p13 = scmp.ge.s32.totalorder %s28_s10, 4   ;;  %s2300_s27 = smov %s1858_s28 }
 0x88d   : > { %s2301_s28 = smov %s1862_s29  ;;  %s2302_s29 = smov %s2046_s25 }
 0x88e   : > { %s2303_s30 = smov %s1870_s9  ;;  %27 = sbr.rel (!%p25_p13) target bundleno = 14 (0xe), region = 126 }
 0x891   : > { %s2304_s9 = smov %s2299_s18 }
 0x893   :  { %1243 = vsyncpa [#allocation4], 1 }
 0x894   :  { %1245 = vsyncpa [#allocation4 + $0x1], 1 }
 0x895   :  { %1246 = vsyncpa [#allocation7], 1 }
 0x896   :  { %1248 = vsyncpa [#allocation7 + $0x1], 1 }
 0x897   :  { %1249 = vsyncpa [#allocation10], 1 }
 0x898   :  { %1250 = vsyncpa [#allocation5], 1 }
 0x899   :  { %1252 = vsyncpa [#allocation5 + $0x1], 1 }

// kernel: tpu_custom_call.1
= control target key start
LH: loop header
LB: loop body
LE: loop exit
PB: predicated region body
PF: predicated region fallthrough
CT: control target
= control target key end

     0   :  { %s2261_s0 = inlined_call_operand.hbm [shape: bf16[2,8,32], index: 0, kind: input, shape index: {}]   ;;  %s2262_s1 = inlined_call_operand.hbm [shape: bf16[2,8,32], index: 1, kind: input, shape index: {}]   ;;  %s2263_s2 = inlined_call_operand.hbm [shape: bf16[32,32], index: 2, kind: input, shape index: {}]   ;;  %s2264_s3 = inlined_call_operand.hbm [shape: bf16[32,64], index: 3, kind: input, shape index: {}]   ;;  %s2265_s4 = inlined_call_operand.hbm [shape: bf16[32,32], index: 4, kind: input, shape index: {}]   ;;  %s2266_s5 = inlined_call_operand.vmem [shape: f32[1,32], index: 5, kind: input, shape index: {}]   ;;  %s2267_s6 = inlined_call_operand.vmem [shape: f32[1,64], index: 6, kind: input, shape index: {}]   ;;  %s2268_s7 = inlined_call_operand.vmem [shape: f32[1,32], index: 7, kind: input, shape index: {}]   ;;  %s2269_s8 = inlined_call_operand.hbm [shape: f32[2,8,32], index: 8, kind: output, shape index: {}]  }
   0x1   :  { %2274 = sst [smem:[#allocation20_spill]] %s2261_s0 }
   0x2   :  { %2275 = sst [smem:[#allocation21_spill]] %s2263_s2 }
   0x3   :  { %2276 = sst [smem:[#allocation22_spill]] %s2264_s3 }
   0x4   :  { %2277 = sst [smem:[#allocation23_spill]] %s2265_s4 }
   0x5   :  { %13 = vsyncpa [#allocation4], 0 }
   0x6   :  { %15 = vsyncpa [#allocation4 + $0x1], 0 }
   0x7   :  { %16 = vsyncpa [#allocation7], 0 }
   0x8   :  { %18 = vsyncpa [#allocation7 + $0x1], 0 }
   0x9   :  { %19 = vsyncpa [#allocation10], 0 }
   0xa   :  { %20 = vsyncpa [#allocation5], 0 }
   0xb   :  { %22 = vsyncpa [#allocation5 + $0x1], 0  ;;  %s1938_s27 = smov 0   ;;  %s1940_s28 = smov 0  }
   0xc   :  { %s1942_s29 = smov 0   ;;  %s1944_s30 = smov 0  }
   0xd   :  { %s1946_s9 = smov 0   ;;  %s1948_s10 = smov 0  }
   0xe LB: > { %s1969_s11 = sadd.s32 4294967295, %s1874_s10   ;;  %s1357_s12 = sadd.s32 4294967294, %s1874_s10   ;;  %s1874_s10 = sphi %s1948_s10, %s28_s10   ;;  %s1870_s9 = sphi %s1946_s9, %s2304_s9   ;;  %s1866_s30 = sphi %s1944_s30, %s2303_s30   ;;  %s1862_s29 = sphi %s1942_s29, %s2302_s29   ;;  %s1858_s28 = sphi %s1940_s28, %s2301_s28   ;;  %s1854_s27 = sphi %s1938_s27, %s2300_s27  }
   0xf   : > { %p62_p0 = scmp.ne.s32.totalorder %s1858_s28, %s1854_s27  ;;  %p2270_p1 = scmp.eq.s32.totalorder %s1969_s11, 0 }
  0x10   : > { %p246_p3 = scmp.eq.s32.totalorder %s1357_s12, 1  ;;  %p1358_p5 = scmp.ge.s32.totalorder %s1874_s10, 1 }
  0x11   : > { %p1978_p4 = por %p2270_p1, %p62_p0  ;;  %p253_p7 = scmp.lt.s32.totalorder %s1874_s10, 3 }
  0x12   : > { %p1983_p6 = por %p246_p3, %p62_p0  ;;  %s1876_s16 = smov [#allocation8]  }
  0x13   : > { %s2278_s13 = scalar_select %p1978_p4, 1, 0 }
  0x14   : > { %s2279_s14 = scalar_select %p1983_p6, 1, 0 }
  0x15   : > { %p1988_p8 = pnand %p1358_p5, %p253_p7  ;;  %s265_s17 = sshll.u32 %s1876_s16, 4  ;;  %s266_s17 = int_to_ptr.vmem [resolvable:$true] %s265_s17 }
  0x16   : > { %2280 = sst [smem:[#allocation18_spill]] %s2279_s14  ;;  %s1877_s19 = smov [#allocation9]  }
  0x17   : > { %p1536_p9 = pneg %p1988_p8  ;;  %s278_s20 = sshll.u32 %s1877_s19, 4  ;;  %s279_s20 = int_to_ptr.vmem [resolvable:$true] %s278_s20 }
  0x18   : > { %s1878_s21 = smov [#allocation11]   ;;  %s1659_s23 = scalar_lea.vmem %s266_s17, 256 }
  0x19   : > { %p1997_p11 = pnand %p1536_p9, %p2270_p1  ;;  %s291_s22 = sshll.u32 %s1878_s21, 4  ;;  %s292_s22 = int_to_ptr.vmem [resolvable:$true] %s291_s22 }
  0x1a   : > { %p1660_p13 = scmp.ne.s32.totalorder %s266_s17, %s1659_s23  ;;  %p1667_p5 = scmp.lt.s32.totalorder %s266_s17, %s266_s17 }
  0x1b   : > { %p1650_p12 = pneg %p1997_p11  ;;  %p1668_p7 = scmp.lt.s32.totalorder %s1659_s23, %s1659_s23 }
  0x1d   : > { %p1662_p0 = pnand %p1660_p13, %p1650_p12  ;;  %p1669_p9 = por %p1668_p7, %p1667_p5 }
  0x1f   : > { %p1663_p3 = pneg %p1662_p0 }
  0x21   : > { %p1670_p10 = pnand %p1669_p9, %p1663_p3 }
  0x23   : > { %1673 = shalt.err (!%p1670_p10)
}
  0x24   : > { %s1879_s24 = smov 64   ;;  %s1880_s25 = smov 4  }
  0x25   : > { %s2283_s2 = sld [smem:[#allocation21_spill]]  ;;  %s1685_s16 = scalar_lea.vmem %s279_s20, 256 }
  0x26   : > { %p1686_p1 = scmp.ne.s32.totalorder %s279_s20, %s1685_s16  ;;  %p1693_p2 = scmp.lt.s32.totalorder %s279_s20, %s279_s20 }
  0x27   : > { %p1694_p6 = scmp.lt.s32.totalorder %s1685_s16, %s1685_s16 }
  0x28   : > { %p1688_p13 = pnand %p1686_p1, %p1650_p12 }
  0x29   : > { %p1695_p5 = por %p1694_p6, %p1693_p2 }
  0x2a   : > { %p1689_p0 = pneg %p1688_p13 }
  0x2b   : > { %1539 = dma.hbm_to_vmem [thread:$0]  (!%p1997_p11), %s2283_s2, 256, %s266_s17, [#allocation7], %s1879_s24, %s1879_s24, %s1880_s25  }
  0x2c   : > { %p1696_p3 = pnand %p1695_p5, %p1689_p0 }
  0x2e   : > { %1699 = shalt.err (!%p1696_p3)
}
  0x2f   : > { %s2284_s3 = sld [smem:[#allocation22_spill]]  ;;  %s1711_s17 = scalar_lea.vmem %s292_s22, 256 }
  0x30   : > { %p1712_p10 = scmp.ne.s32.totalorder %s292_s22, %s1711_s17  ;;  %p1719_p9 = scmp.lt.s32.totalorder %s292_s22, %s292_s22 }
  0x31   : > { %p1720_p13 = scmp.lt.s32.totalorder %s1711_s17, %s1711_s17 }
  0x32   : > { %p1714_p7 = pnand %p1712_p10, %p1650_p12 }
  0x33   : > { %p1721_p4 = por %p1720_p13, %p1719_p9 }
  0x34   : > { %p1715_p1 = pneg %p1714_p7 }
  0x35   : > { %1542 = dma.hbm_to_vmem [thread:$0]  (!%p1997_p11), %s2284_s3, 256, %s279_s20, [#allocation10], %s1879_s24, %s1879_s24, %s1880_s25  }
  0x36   : > { %p1722_p2 = pnand %p1721_p4, %p1715_p1 }
  0x38   : > { %1725 = shalt.err (!%p1722_p2)
}
  0x39   : > { %s2285_s4 = sld [smem:[#allocation23_spill]]  ;;  %s49_s20 = sadd.s32 1, %s1862_s29 }
  0x3a   : > { %s40_s12 = sadd.s32 1, %s1870_s9  ;;  %p56_p4 = scmp.ne.s32.totalorder %s1862_s29, %s1858_s28 }
  0x3b   : > { %p42_p6 = scmp.ge.s32.totalorder %s40_s12, 2  ;;  %p57_p12 = scmp.eq.s32.totalorder %s1874_s10, 0 }
  0x3c   : > { %p2286_p0 = scmp.eq.s32.totalorder %s1969_s11, 1  ;;  %p1560_p3 = scmp.lt.s32.totalorder %s1874_s10, 2 }
  0x3d   : > { %s2306_s12 = smov (%p42_p6, %s40_s12), 0  ;;  %p58_p10 = por %p57_p12, %p56_p4 }
  0x3e   : > { %p2034_p5 = por %p2286_p0, %p56_p4  ;;  %2288 = sst [smem:[#allocation19_spill]] %s2306_s12 }
  0x3f   : > { %1545 = dma.hbm_to_vmem [thread:$0]  (!%p1997_p11), %s2285_s4, 256, %s292_s22, [#allocation10], %s1879_s24, %s1879_s24, %s1880_s25  }
  0x40   : > { %s314_s16 = sand.u32 1, %s1862_s29   ;;  %s44_s19 = ssub.s32 %s1870_s9, %s2306_s12 }
  0x41   : > { %p47_p11 = scmp.eq.s32.totalorder %s44_s19, 0  ;;  %s1363_s22 = sshll.u32 %s314_s16, 2 }
  0x42   : > { %s1364_s24 = sshll.u32 %s1870_s9, 6  ;;  %s2289_s0 = sld [smem:[#allocation20_spill]] }
  0x43   : > { %s2046_s25 = scalar_select %p47_p11, %s1862_s29, %s49_s20  }
  0x44   : > { %s318_s26 = scalar_lea.vmem [#allocation3], %s1363_s22  ;;  %p2053_p7 = pnand %p1560_p3, %p58_p10 }
  0x45   : > { %s326_s2 = sshll.u32 %s318_s26, 4  ;;  %s2060_s19 = scalar_lea.hbm %s2262_s1, %s1364_s24  ;;  %s327_s2 = int_to_ptr.vmem [resolvable:$true] %s326_s2 }
  0x46   : > { %s333_s20 = sand.u32 1, %s1874_s10   ;;  %s315_s12 = scalar_lea.sflag [#allocation4], %s314_s16 }
  0x47   : > { %p1728_p1 = pneg %p2053_p7  ;;  %s1739_s21 = scalar_lea.vmem %s327_s2, 64 }
  0x48   : > { %s324_s23 = scalar_lea.hbm %s2289_s0, %s1364_s24  ;;  %p1740_p9 = scmp.ne.s32.totalorder %s327_s2, %s1739_s21 }
  0x49   : > { %s1881_s17 = smov [#allocation3]  }
  0x4a   : > { %p1742_p13 = pnand %p1740_p9, %p1728_p1  ;;  %s1744_s26 = sshll.u32 %s1881_s17, 4  ;;  %s1745_s26 = int_to_ptr.vmem [resolvable:$false] %s1744_s26 }
  0x4b   : > { %s1746_s0 = scalar_lea.vmem %s1745_s26, 128  ;;  %p1747_p4 = scmp.lt.s32.totalorder %s327_s2, %s1745_s26 }
  0x4c   : > { %p1743_p2 = pneg %p1742_p13  ;;  %p1748_p6 = scmp.lt.s32.totalorder %s1746_s0, %s1739_s21 }
  0x4e   : > { %p1749_p12 = por %p1748_p6, %p1747_p4 }
  0x50   : > { %p1750_p0 = pnand %p1749_p12, %p1743_p2 }
  0x52   : > { %1753 = shalt.err (!%p1750_p0)
}
  0x53   : > { %1549 = dma.hbm_to_vmem [thread:$0]  (!%p2053_p7), %s324_s23, 64, %s327_s2, %s315_s12  }
  0x54   : > { %s337_s4 = scalar_lea.vmem [#allocation6], %s1363_s22  ;;  %s334_s16 = scalar_lea.sflag [#allocation7], %s333_s20 }
  0x55   : > { %s344_s14 = sshll.u32 %s337_s4, 4  ;;  %s1882_s17 = smov [#allocation6]   ;;  %s345_s14 = int_to_ptr.vmem [resolvable:$true] %s344_s14 }
  0x56   : > { %s1767_s24 = scalar_lea.vmem %s345_s14, 64  ;;  %s1772_s26 = sshll.u32 %s1882_s17, 4  ;;  %s1773_s26 = int_to_ptr.vmem [resolvable:$false] %s1772_s26 }
  0x57   : > { %p1768_p3 = scmp.ne.s32.totalorder %s345_s14, %s1767_s24  ;;  %s1774_s0 = scalar_lea.vmem %s1773_s26, 128 }
  0x58   : > { %p1775_p9 = scmp.lt.s32.totalorder %s345_s14, %s1773_s26  ;;  %p1776_p13 = scmp.lt.s32.totalorder %s1774_s0, %s1767_s24 }
  0x59   : > { %p1770_p10 = pnand %p1768_p3, %p1728_p1 }
  0x5a   : > { %p1777_p2 = por %p1776_p13, %p1775_p9 }
  0x5b   : > { %p1771_p11 = pneg %p1770_p10 }
  0x5d   : > { %p1778_p4 = pnand %p1777_p2, %p1771_p11 }
  0x5f   : > { %1781 = shalt.err (!%p1778_p4)
}
  0x60   : > { %1552 = dma.hbm_to_vmem [thread:$0]  (!%p2053_p7), %s2060_s19, 64, %s345_s14, %s334_s16  }
  0x61   : > { %353 = sbr.rel (%p1988_p8) target bundleno = 2174 (0x87e), region = 52  ;;  %s2079_s2 = sand.u32 (!%p1988_p8), 1, %s1858_s28  }
  0x62   : > { %s1368_s12 = sshll.u32 (!%p1988_p8), %s2079_s2, 2  ;;  %s356_s22 = scalar_lea.sflag (!%p1988_p8), [#allocation4], %s2079_s2 }
  0x63   : > { %s2083_s23 = scalar_lea.vmem (!%p1988_p8), [#allocation3], %s1368_s12  ;;  %p2291_p1 = scmp.ne.s32.totalorder (!%p1988_p8), %s2278_s13, 0 }
  0x66   : > { %1833 = dma.done.wait (%p2291_p1), %s356_s22, 64  }
  0x67   : > { %1835 = vsyncadd (%p2291_p1), %s356_s22, 4294967232  ;;  %s364_s3 = sand.u32 1, %s1969_s11   ;;  %s368_s19 = scalar_lea.vmem [#allocation6], %s1368_s12 }
  0x68   : > { %s365_s15 = scalar_lea.sflag [#allocation7], %s364_s3 }
  0x69   : > { %1837 = dma.done.wait (%p2291_p1), %s365_s15, 64  }
  0x6a   : > { %1839 = vsyncadd (%p2291_p1), %s365_s15, 4294967232  ;;  %p2292_p8 = scmp.eq.s32.totalorder %s1969_s11, 0 }
  0x6c   : > { %1841 = dma.done.wait (%p2292_p8), [#allocation7], 256   ;;  %p2293_p7 = pmov %p2292_p8 }
  0x6e   : > { %1843 = vsyncadd (%p2293_p7), [#allocation7], 4294967040  ;;  %p2294_p6 = pmov %p2293_p7 }
  0x70   : > { %1845 = dma.done.wait (%p2294_p6), [#allocation10], 512   ;;  %p2295_p12 = pmov %p2294_p6 }
  0x71   : > { %v1883_v0 = vmov 0.0   ;;  %vm1884_vm0 = vmmov 0   ;;  %v1627_v1 = vld [vmem:[#allocation9 + $0x8] sm:$0xff]   ;;  %v1628_v2 = vld [vmem:[#allocation9] sm:$0xff]   ;;  %v1629_v3 = vld [vmem:[#allocation8 + $0x8] sm:$0xff]   ;;  %vm447_vm1 = vcmask 261120  }
  0x72   : > { %1847 = vsyncadd (%p2295_p12), [#allocation10], 4294966784  ;;  %1430 = vmatprep.subr.bf16.mxu0 %v1883_v0  ;;  %1434 = vmatprep.mubr.msk.bf16.mxu0 %vm1884_vm0, %v1883_v0  ;;  %v1630_v4 = vld [vmem:[#allocation8] sm:$0xff]   ;;  %v423_v5 = vld [vmem:[%s368_s19] sm:$0xf]  ;;  %vm492_vm2 = vcmask 519168  }
  0x73   : > { %1438 = vmatprep.subr.bf16.mxu1 %v1883_v0  ;;  %1442 = vmatprep.mubr.msk.bf16.mxu1 %vm1884_vm0, %v1883_v0  ;;  %v494_v6 = vld [vmem:[%s2083_s23] sm:$0xf]  ;;  %v1374_v7 = vld [vmem:[%s2267_s6] ss:$0 sm:$0xff]  ;;  %vm571_vm3 = vcmask 64512   ;;  %s1885_s4 = smov 120  }
  0x74   : > { %1431 = vmatpush3.bf16.msra.mxu0 %v1627_v1  ;;  %1439 = vmatpush3.bf16.msra.mxu1 %v1629_v3  ;;  %v1378_v17 = vld [vmem:[%s2266_s5] ss:$0 sm:$0xff]  ;;  %s1886_s14 = smov 96   ;;  %vm637_vm4 = vcmask 1043456   ;;  %s1887_s16 = smov 88  }
  0x75   : > { %1432 = vmatprep.subr.bf16.mxu0 %v1883_v0  ;;  %1440 = vmatprep.subr.bf16.mxu1 %v1883_v0  ;;  %s1888_s24 = smov 112   ;;  %v683_v40 = vld [vmem:[#allocation11] sm:$0xf]  ;;  %s1889_s17 = smov 80  }
  0x76   : > { %v688_v41 = vsel %vm637_vm4, %v683_v40, 0  ;;  %s1890_s26 = smov 104   ;;  %s1891_s0 = smov 72  }
  0x77   : > { %s1373_s23 = sshll.u32 %s2079_s2, 3  ;;  %s1397_s3 = sshll.u32 %s1866_s30, 7 }
  0x78   : > { %1433 = vmatpush3.bf16.msra.mxu0 %v1628_v2  ;;  %1441 = vmatpush3.bf16.msra.mxu1 %v1630_v4  ;;  %s417_s15 = scalar_lea.vmem [#allocation12], %s1373_s23  ;;  %s2212_s20 = scalar_lea.hbm %s2269_s8, %s1397_s3 }
  0x79   : > { %1446 = vmatprep.subr.bf16.mxu0 %v1883_v0  ;;  %1452 = vmatprep.subr.bf16.mxu1 %v1883_v0  ;;  %s1225_s19 = sshll.u32 %s417_s15, 4  ;;  %s1211_s21 = scalar_lea.sflag [#allocation5], %s2079_s2  ;;  %s2214_s19 = int_to_ptr.vmem [resolvable:$true] %s1225_s19 }
  0x7a   : > { %s1782_s30 = scalar_lea.vmem %s2214_s19, 128 }
  0x7b   : > { %1435 = vmatmul.mubr.msk.bf16.vlgmr.msra.gmra.mxu0 %vm447_vm1, %v423_v5  ;;  %1443 = vmatmul.mubr.msk.bf16.vlgmr.msra.gmra.mxu1 %vm447_vm1, %v494_v6  ;;  %p1783_p0 = scmp.ne.s32.totalorder %s2214_s19, %s1782_s30 }
  0x7c   : > { %1448 = vmatprep.mubr.msk.bf16.mxu0 %vm1884_vm0, %v1883_v0  ;;  %1454 = vmatprep.mubr.msk.bf16.mxu1 %vm1884_vm0, %v1883_v0 }
  0x7d   : > { %p1784_p3 = pnand %p1783_p0, %p2034_p5 }
  0x7f   : > { %p1785_p10 = pneg %p1784_p3 }
 0x13b   : > { %v485_v8 = vpop.f32.mrf.mxu0  ;;  %v556_v12 = vpop.f32.mrf.mxu1 }
 0x13c   : > { %v486_v9 = vadd.f32 %v1374_v7, %v485_v8  ;;  %v557_v19 = vadd.f32 %v1378_v17, %v556_v12  ;;  %v843_v7 = vld [vmem:[#allocation11 + $0x4] sm:$0xf] }
 0x13d   : > { %v1436_v10 = vpop.f32.mrf.mxu0  ;;  %v1444_v14 = vpop.f32.mrf.mxu1  ;;  %v848_v8 = vsel %vm637_vm4, %v843_v7, 0 }
 0x13e   : > { %v491_v11 = vpack.c.bf16 %v486_v9, %v486_v9  ;;  %v2128_v23 = vpack.c.bf16 %v557_v19, %v557_v19 }
 0x13f   : > { %v488_v13 = vpop.f32.mrf.mxu0  ;;  %v559_v16 = vpop.f32.mrf.mxu1 }
 0x140   : > { %493 = vst.msk [vmem:[#allocation2] sm:$0xf] %vm492_vm2, %v491_v11 }
 0x141   : > { %v1437_v15 = vpop.f32.mrf.mxu0  ;;  %v1445_v18 = vpop.f32.mrf.mxu1 }
 0x147   : > { %v563_v20 = vld [vmem:[#allocation2] sm:$0xf] }
 0x148   : > { %v576_v21 = vsel %vm571_vm3, %v563_v20, 0  ;;  %v2126_v22 = vcombine.low %v563_v20, %v563_v20 }
 0x149   : > { %1447 = vmatpush3.bf16.xpose.msra.mxu0 %v576_v21 }
 0x14a   : > { %734 = vrot.lane.b32.xlu1 %v2126_v22, %s1885_s4  ;;  %1458 = vmatprep.subr.bf16.mxu0 %v1883_v0 }
 0x14e   : > { %732 = vrot.lane.b32.xlu1 %v2128_v23, %s1885_s4  ;;  %s1892_s4 = smov [#allocation12]  }
 0x150   : > { %1449 = vmatmul.mubr.msk.bf16.vlgmr.msra.gmra.mxu0 %vm571_vm3, %v2128_v23 }
 0x151   : > { %1460 = vmatprep.mubr.msk.bf16.mxu0 %vm1884_vm0, %v1883_v0  ;;  %1459 = vmatpush3.bf16.msra.mxu0 %v688_v41  ;;  %v1002_v41 = vld [vmem:[#allocation11 + $0x8] sm:$0xf] }
 0x152   : > { %1470 = vmatprep.subr.bf16.mxu0 %v1883_v0 }
 0x1bc   : > { %v735_v35 = vpop.permute.xlu1 %734 }
 0x1bd   : > { %v740_v38 = vsel %vm571_vm3, %v735_v35, 0 }
 0x1c0   : > { %v733_v39 = vpop.permute.xlu1 %732 }
 0x210   : > { %v612_v24 = vpop.f32.mrf.mxu0 }
 0x211   : > { %v618_v25 = vsel %vm571_vm3, %v612_v24, -inf }
 0x212   : > { %619 = vmax.xlane.f32.xlu0 %v618_v25  ;;  %v1450_v26 = vpop.f32.mrf.mxu0 }
 0x214   : > { %v615_v27 = vpop.f32.mrf.mxu0 }
 0x216   : > { %v1451_v28 = vpop.f32.mrf.mxu0 }
 0x228   : > { %632 = vrot.lane.b32.xlu0 %v2126_v22, %s1886_s14  ;;  %s1786_s14 = sshll.u32 %s1892_s4, 4  ;;  %s1787_s14 = int_to_ptr.vmem [resolvable:$false] %s1786_s14 }
 0x229   : > { %p1789_p11 = scmp.lt.s32.totalorder %s2214_s19, %s1787_s14 }
 0x29b   : > { %v620_v29 = vpop.xlane.xlu0 %619 }
 0x29c   : > { %v621_v30 = vsub.f32 %v612_v24, %v620_v29 }
 0x29e   : > { %v622_v31 = vmul.f32 1.442695, %v621_v30 }
 0x29f   : > { %v633_v32 = vpop.permute.xlu0 %632 }
 0x2a0   : > { %1632 = vpow2.f32 %v622_v31  ;;  %v639_v33 = vsel %vm637_vm4, %v633_v32, 0 }
 0x2a1   : > { %1453 = vmatpush3.bf16.msra.mxu1 %v639_v33 }
 0x2a2   : > { %1464 = vmatprep.subr.bf16.mxu1 %v1883_v0 }
 0x2ad   : > { %v1633_v34 = vpop.eup %1632 }
 0x2ae   : > { %v624_v36 = vsel %vm571_vm3, %v1633_v34, 0.0  ;;  %v628_v37 = vpack.c.bf16 %v1633_v34, %v1633_v34  ;;  %v1382_v34 = vld [vmem:[%s2268_s7] ss:$0 sm:$0xff] }
 0x2af   : > { %625 = vadd.xlane.f32.xlu1 %v624_v36 }
 0x2b0   : > { %1455 = vmatmul.mubr.msk.bf16.vlgmr.msra.gmra.mxu1 %vm571_vm3, %v628_v37 }
 0x2b1   : > { %1465 = vmatpush3.bf16.xpose.msra.mxu1 %v740_v38  ;;  %1466 = vmatprep.mubr.msk.bf16.mxu1 %vm1884_vm0, %v1883_v0 }
 0x2b2   : > { %1476 = vmatprep.subr.bf16.mxu1 %v1883_v0 }
 0x2b8   : > { %1467 = vmatmul.mubr.msk.bf16.vlgmr.msra.gmra.mxu1 %vm571_vm3, %v733_v39 }
 0x2b9   : > { %1478 = vmatprep.mubr.msk.bf16.mxu1 %vm1884_vm0, %v1883_v0  ;;  %1477 = vmatpush3.bf16.msra.mxu1 %v848_v8 }
 0x2ba   : > { %1488 = vmatprep.subr.bf16.mxu1 %v1883_v0 }
 0x2c0   : > { %793 = vrot.lane.b32.xlu1 %v2126_v22, %s1887_s16  ;;  %s1788_s16 = scalar_lea.vmem %s1787_s14, 256 }
 0x2c1   : > { %p1790_p9 = scmp.lt.s32.totalorder %s1788_s16, %s1782_s30 }
 0x2c3   : > { %p1791_p13 = por %p1790_p9, %p1789_p11 }
 0x2c4   : > { %891 = vrot.lane.b32.xlu1 %v2128_v23, %s1888_s24 }
 0x2c5   : > { %p1792_p2 = pnand %p1791_p13, %p1785_p10 }
 0x338   : > { %v626_v42 = vpop.xlane.xlu1 %625 }
 0x339   : > { %1634 = vrcp.f32 %v626_v42  ;;  %v1007_v42 = vsel %vm637_vm4, %v1002_v41, 0 }
 0x33c   : > { %v794_v46 = vpop.permute.xlu1 %793 }
 0x33d   : > { %v799_v50 = vsel %vm637_vm4, %v794_v46, 0 }
 0x340   : > { %v892_v2 = vpop.permute.xlu1 %891 }
 0x346   : > { %v1635_v43 = vpop.eup %1634 }
 0x370   : > { %v675_v44 = vpop.f32.mrf.mxu1 }
 0x371   : > { %v681_v45 = vmul.f32 %v1635_v43, %v675_v44 }
 0x372   : > { %v1456_v47 = vpop.f32.mrf.mxu1 }
 0x373   : > { %v682_v48 = vpack.c.bf16 %v681_v45, %v681_v45 }
 0x374   : > { %v678_v49 = vpop.f32.mrf.mxu1 }
 0x375   : > { %1461 = vmatmul.mubr.msk.bf16.vlgmr.msra.gmra.mxu0 %vm571_vm3, %v682_v48 }
 0x376   : > { %1471 = vmatpush3.bf16.msra.mxu0 %v799_v50  ;;  %v1457_v51 = vpop.f32.mrf.mxu1  ;;  %1472 = vmatprep.mubr.msk.bf16.mxu0 %vm1884_vm0, %v1883_v0 }
 0x377   : > { %1482 = vmatprep.subr.bf16.mxu0 %v1883_v0 }
 0x378   : > { %v776_v52 = vpop.f32.mrf.mxu1 }
 0x379   : > { %v782_v53 = vsel %vm571_vm3, %v776_v52, -inf }
 0x37a   : > { %783 = vmax.xlane.f32.xlu0 %v782_v53  ;;  %v1468_v54 = vpop.f32.mrf.mxu1 }
 0x37c   : > { %v779_v55 = vpop.f32.mrf.mxu1 }
 0x37e   : > { %v1469_v56 = vpop.f32.mrf.mxu1 }
 0x390   : > { %893 = vrot.lane.b32.xlu0 %v2126_v22, %s1888_s24 }
 0x403   : > { %v784_v57 = vpop.xlane.xlu0 %783 }
 0x404   : > { %v785_v58 = vsub.f32 %v776_v52, %v784_v57 }
 0x406   : > { %v786_v59 = vmul.f32 1.442695, %v785_v58 }
 0x407   : > { %v894_v61 = vpop.permute.xlu0 %893 }
 0x408   : > { %1636 = vpow2.f32 %v786_v59  ;;  %v899_v1 = vsel %vm571_vm3, %v894_v61, 0 }
 0x415   : > { %v1637_v60 = vpop.eup %1636 }
 0x416   : > { %v788_v62 = vsel %vm571_vm3, %v1637_v60, 0.0  ;;  %v792_v63 = vpack.c.bf16 %v1637_v60, %v1637_v60 }
 0x417   : > { %789 = vadd.xlane.f32.xlu1 %v788_v62 }
 0x418   : > { %1473 = vmatmul.mubr.msk.bf16.vlgmr.msra.gmra.mxu0 %vm571_vm3, %v792_v63  ;;  %v1161_v63 = vld [vmem:[#allocation11 + $0xc] sm:$0xf] }
 0x419   : > { %1483 = vmatpush3.bf16.xpose.msra.mxu0 %v899_v1  ;;  %1484 = vmatprep.mubr.msk.bf16.mxu0 %vm1884_vm0, %v1883_v0 }
 0x41a   : > { %1494 = vmatprep.subr.bf16.mxu0 %v1883_v0 }
 0x420   : > { %1485 = vmatmul.mubr.msk.bf16.vlgmr.msra.gmra.mxu0 %vm571_vm3, %v892_v2 }
 0x421   : > { %1496 = vmatprep.mubr.msk.bf16.mxu0 %vm1884_vm0, %v1883_v0  ;;  %1495 = vmatpush3.bf16.msra.mxu0 %v1007_v42 }
 0x422   : > { %1506 = vmatprep.subr.bf16.mxu0 %v1883_v0 }
 0x428   : > { %952 = vrot.lane.b32.xlu1 %v2126_v22, %s1889_s17 }
 0x42c   : > { %1050 = vrot.lane.b32.xlu1 %v2128_v23, %s1890_s26 }
 0x435   : > { %v724_v3 = vpop.f32.mrf.mxu0 }
 0x436   : > { %v730_v35 = vadd.f32 %v1382_v34, %v724_v3 }
 0x437   : > { %v1462_v4 = vpop.f32.mrf.mxu0 }
 0x439   : > { %v727_v5 = vpop.f32.mrf.mxu0 }
 0x43b   : > { %v1463_v6 = vpop.f32.mrf.mxu0 }
 0x4a0   : > { %v790_v9 = vpop.xlane.xlu1 %789 }
 0x4a1   : > { %1638 = vrcp.f32 %v790_v9 }
 0x4a4   : > { %v953_v13 = vpop.permute.xlu1 %952 }
 0x4a5   : > { %v958_v17 = vsel %vm637_vm4, %v953_v13, 0 }
 0x4a8   : > { %v1051_v33 = vpop.permute.xlu1 %1050 }
 0x4ae   : > { %v1639_v10 = vpop.eup %1638 }
 0x4d8   : > { %v835_v11 = vpop.f32.mrf.mxu0 }
 0x4d9   : > { %v841_v12 = vmul.f32 %v1639_v10, %v835_v11 }
 0x4da   : > { %v1474_v14 = vpop.f32.mrf.mxu0 }
 0x4db   : > { %v842_v15 = vpack.c.bf16 %v841_v12, %v841_v12 }
 0x4dc   : > { %v838_v16 = vpop.f32.mrf.mxu0 }
 0x4dd   : > { %1479 = vmatmul.mubr.msk.bf16.vlgmr.msra.gmra.mxu1 %vm571_vm3, %v842_v15 }
 0x4de   : > { %1489 = vmatpush3.bf16.msra.mxu1 %v958_v17  ;;  %v1475_v18 = vpop.f32.mrf.mxu0  ;;  %1490 = vmatprep.mubr.msk.bf16.mxu1 %vm1884_vm0, %v1883_v0 }
 0x4df   : > { %1500 = vmatprep.subr.bf16.mxu1 %v1883_v0 }
 0x4e0   : > { %v935_v19 = vpop.f32.mrf.mxu0 }
 0x4e1   : > { %v941_v20 = vsel %vm571_vm3, %v935_v19, -inf }
 0x4e2   : > { %942 = vmax.xlane.f32.xlu0 %v941_v20  ;;  %v1486_v21 = vpop.f32.mrf.mxu0 }
 0x4e4   : > { %v938_v23 = vpop.f32.mrf.mxu0 }
 0x4e6   : > { %v1487_v24 = vpop.f32.mrf.mxu0 }
 0x4f8   : > { %1052 = vrot.lane.b32.xlu0 %v2126_v22, %s1890_s26 }
 0x56b   : > { %v943_v25 = vpop.xlane.xlu0 %942 }
 0x56c   : > { %v944_v26 = vsub.f32 %v935_v19, %v943_v25 }
 0x56e   : > { %v945_v27 = vmul.f32 1.442695, %v944_v26 }
 0x56f   : > { %v1053_v29 = vpop.permute.xlu0 %1052 }
 0x570   : > { %1640 = vpow2.f32 %v945_v27  ;;  %v1058_v32 = vsel %vm571_vm3, %v1053_v29, 0 }
 0x57d   : > { %v1641_v28 = vpop.eup %1640 }
 0x57e   : > { %v947_v30 = vsel %vm571_vm3, %v1641_v28, 0.0  ;;  %v951_v31 = vpack.c.bf16 %v1641_v28, %v1641_v28 }
 0x57f   : > { %948 = vadd.xlane.f32.xlu1 %v947_v30 }
 0x580   : > { %1491 = vmatmul.mubr.msk.bf16.vlgmr.msra.gmra.mxu1 %vm571_vm3, %v951_v31 }
 0x581   : > { %1501 = vmatpush3.bf16.xpose.msra.mxu1 %v1058_v32  ;;  %1502 = vmatprep.mubr.msk.bf16.mxu1 %vm1884_vm0, %v1883_v0 }
 0x582   : > { %1512 = vmatprep.subr.bf16.mxu1 %v1883_v0 }
 0x588   : > { %1503 = vmatmul.mubr.msk.bf16.vlgmr.msra.gmra.mxu1 %vm571_vm3, %v1051_v33 }
 0x589   : > { %1514 = vmatprep.mubr.msk.bf16.mxu1 %vm1884_vm0, %v1883_v0 }
 0x590   : > { %1111 = vrot.lane.b32.xlu1 %v2126_v22, %s1891_s0 }
 0x59d   : > { %v884_v36 = vpop.f32.mrf.mxu1 }
 0x59e   : > { %v890_v37 = vadd.f32 %v884_v36, %v730_v35 }
 0x59f   : > { %v1480_v38 = vpop.f32.mrf.mxu1 }
 0x5a1   : > { %v887_v39 = vpop.f32.mrf.mxu1 }
 0x5a3   : > { %v1481_v40 = vpop.f32.mrf.mxu1 }
 0x608   : > { %v949_v43 = vpop.xlane.xlu1 %948 }
 0x609   : > { %1642 = vrcp.f32 %v949_v43 }
 0x60c   : > { %v1112_v46 = vpop.permute.xlu1 %1111 }
 0x60d   : > { %v1117_v50 = vsel %vm637_vm4, %v1112_v46, 0 }
 0x616   : > { %v1643_v44 = vpop.eup %1642 }
 0x640   : > { %v994_v22 = vpop.f32.mrf.mxu1 }
 0x641   : > { %v1000_v45 = vmul.f32 %v1643_v44, %v994_v22 }
 0x642   : > { %v1492_v47 = vpop.f32.mrf.mxu1 }
 0x643   : > { %v1001_v48 = vpack.c.bf16 %v1000_v45, %v1000_v45 }
 0x644   : > { %v997_v49 = vpop.f32.mrf.mxu1 }
 0x645   : > { %1497 = vmatmul.mubr.msk.bf16.vlgmr.msra.gmra.mxu0 %vm571_vm3, %v1001_v48 }
 0x646   : > { %1507 = vmatpush3.bf16.msra.mxu0 %v1117_v50  ;;  %v1493_v51 = vpop.f32.mrf.mxu1  ;;  %1508 = vmatprep.mubr.msk.bf16.mxu0 %vm1884_vm0, %v1883_v0  ;;  %v1166_v0 = vsel %vm637_vm4, %v1161_v63, 0 }
 0x647   : > { %1513 = vmatpush3.bf16.msra.mxu1 %v1166_v0 }
 0x648   : > { %v1094_v52 = vpop.f32.mrf.mxu1 }
 0x649   : > { %v1100_v53 = vsel %vm571_vm3, %v1094_v52, -inf }
 0x64a   : > { %1101 = vmax.xlane.f32.xlu0 %v1100_v53  ;;  %v1504_v54 = vpop.f32.mrf.mxu1 }
 0x64c   : > { %v1097_v55 = vpop.f32.mrf.mxu1 }
 0x64e   : > { %v1505_v56 = vpop.f32.mrf.mxu1 }
 0x6d3   : > { %v1102_v57 = vpop.xlane.xlu0 %1101 }
 0x6d4   : > { %v1103_v58 = vsub.f32 %v1094_v52, %v1102_v57 }
 0x6d6   : > { %v1104_v59 = vmul.f32 1.442695, %v1103_v58 }
 0x6d8   : > { %1644 = vpow2.f32 %v1104_v59 }
 0x6e5   : > { %v1645_v60 = vpop.eup %1644 }
 0x6e6   : > { %v1106_v61 = vsel %vm571_vm3, %v1645_v60, 0.0  ;;  %v1110_v62 = vpack.c.bf16 %v1645_v60, %v1645_v60 }
 0x6e7   : > { %1107 = vadd.xlane.f32.xlu0 %v1106_v61 }
 0x6e8   : > { %1509 = vmatmul.mubr.msk.bf16.vlgmr.msra.gmra.mxu0 %vm571_vm3, %v1110_v62 }
 0x705   : > { %v1043_v1 = vpop.f32.mrf.mxu0 }
 0x706   : > { %v1049_v2 = vadd.f32 %v1043_v1, %v890_v37 }
 0x707   : > { %v1498_v3 = vpop.f32.mrf.mxu0 }
 0x709   : > { %v1046_v4 = vpop.f32.mrf.mxu0 }
 0x70b   : > { %v1499_v5 = vpop.f32.mrf.mxu0 }
 0x770   : > { %v1108_v6 = vpop.xlane.xlu0 %1107 }
 0x771   : > { %1646 = vrcp.f32 %v1108_v6 }
 0x77e   : > { %v1647_v7 = vpop.eup %1646 }
 0x7a8   : > { %v1153_v8 = vpop.f32.mrf.mxu0 }
 0x7a9   : > { %v1159_v9 = vmul.f32 %v1647_v7, %v1153_v8 }
 0x7aa   : > { %v1510_v10 = vpop.f32.mrf.mxu0 }
 0x7ab   : > { %v1160_v11 = vpack.c.bf16 %v1159_v9, %v1159_v9 }
 0x7ac   : > { %v1156_v12 = vpop.f32.mrf.mxu0 }
 0x7ad   : > { %1515 = vmatmul.mubr.msk.bf16.vlgmr.msra.gmra.mxu1 %vm571_vm3, %v1160_v11 }
 0x7ae   : > { %v1511_v13 = vpop.f32.mrf.mxu0 }
 0x86d   : > { %v1202_v14 = vpop.f32.mrf.mxu1 }
 0x86e   : > { %v1208_v15 = vadd.f32 %v1202_v14, %v1049_v2 }
 0x86f   : > { %v1516_v16 = vpop.f32.mrf.mxu1 }
 0x870   : > { %1209 = vst.msk [vmem:[%s417_s15] sm:$0xff] %vm447_vm1, %v1208_v15 }
 0x871   : > { %v1205_v17 = vpop.f32.mrf.mxu1 }
 0x872   : > { %1795 = shalt.err (!%p1792_p2)
}
 0x873   : > { %s1796_s24 = scalar_lea.hbm %s2212_s20, 128  ;;  %s1800_s26 = scalar_lea.hbm %s2269_s8, 256 }
 0x874   : > { %p1797_p4 = scmp.ne.s32.totalorder %s2212_s20, %s1796_s24  ;;  %p1801_p7 = scmp.lt.s32.totalorder %s2212_s20, %s2269_s8 }
 0x875   : > { %p1802_p6 = scmp.lt.s32.totalorder %s1800_s26, %s1796_s24 }
 0x876   : > { %p1798_p1 = pnand %p1797_p4, %p2034_p5 }
 0x877   : > { %p1803_p12 = por %p1802_p6, %p1801_p7 }
 0x878   : > { %p1799_p8 = pneg %p1798_p1 }
 0x87a   : > { %p1804_p0 = pnand %p1803_p12, %p1799_p8 }
 0x87c   : > { %1807 = shalt.err (!%p1804_p0)
}
 0x87d   : > { %1534 = dma.vmem_to_hbm [thread:$0]  (%p2034_p5), %s2214_s19, 128, %s2212_s20, %s1211_s21   ;;  %v1517_v18 = vpop.f32.mrf.mxu1 }
 0x87e PF: > { %s2296_s22 = sld [smem:[#allocation18_spill]]  ;;  %s1237_s23 = sand.u32 1, %s1854_s27  }
 0x87f   : > { %p2298_p10 = scmp.ge.s32.totalorder %s1874_s10, 2  ;;  %s1238_s3 = scalar_lea.sflag [#allocation5], %s1237_s23 }
 0x884   : > { %p2297_p3 = scmp.ne.s32.totalorder %s2296_s22, 0 }
 0x886   : > { %p1554_p11 = pnand %p2298_p10, %p2297_p3 }
 0x888   : > { %p1555_p9 = pneg %p1554_p11 }
 0x88a   : > { %1849 = dma.done.wait (%p1555_p9), %s1238_s3, 128  }
 0x88b   : > { %1851 = vsyncadd (%p1555_p9), %s1238_s3, 4294967168  ;;  %s28_s10 = sadd.s32 1, %s1874_s10   ;;  %s2299_s18 = sld [smem:[#allocation19_spill]] }
 0x88c   : > { %p25_p13 = scmp.ge.s32.totalorder %s28_s10, 4   ;;  %s2300_s27 = smov %s1858_s28 }
 0x88d   : > { %s2301_s28 = smov %s1862_s29  ;;  %s2302_s29 = smov %s2046_s25 }
 0x88e   : > { %s2303_s30 = smov %s1870_s9  ;;  %27 = sbr.rel (!%p25_p13) target bundleno = 14 (0xe), region = 126 }
 0x891   : > { %s2304_s9 = smov %s2299_s18 }
 0x893   :  { %1243 = vsyncpa [#allocation4], 1 }
 0x894   :  { %1245 = vsyncpa [#allocation4 + $0x1], 1 }
 0x895   :  { %1246 = vsyncpa [#allocation7], 1 }
 0x896   :  { %1248 = vsyncpa [#allocation7 + $0x1], 1 }
 0x897   :  { %1249 = vsyncpa [#allocation10], 1 }
 0x898   :  { %1250 = vsyncpa [#allocation5], 1 }
 0x899   :  { %1252 = vsyncpa [#allocation5 + $0x1], 1 }

</bundles_post_ra>
